<compile_context>
chip_gen: v7x
topology: tpu7x:2x2x1
jax: 0.10.0
libtpu: 0.0.40
codegen_flags: <defaults>
</compile_context>

<pallas_src>
import math
import jax
import jax.numpy as jnp
from jax.experimental import pallas as pl
from jax.experimental.pallas import tpu as pltpu

# --- model hyperparameters (small, consistent with the module's `args`) ---
BATCH = 2
SEQ = 8
HIDDEN = 32
HEADS = 2
HEAD_SIZE = HIDDEN // HEADS
NUM_LAYERS = 2
EPS = 1e-12

# --- packed-parameter row layout (buffer width = 3*HIDDEN = 96 lanes) ---
ROW_WQKV = 0                 # rows [0, H)    : [Wq^T | Wk^T | Wv^T]   (H, 3H)
ROW_WOUT = HIDDEN            # rows [H, 2H)   : [Wd^T | W1^T | W2^T]   (H, 3H)
ROW_VECS = 2 * HIDDEN        # rows [2H, 2H+4):
                             #   +0: [bq  | bk  | bv ]
                             #   +1: [bd  | g1  | be1]
                             #   +2: [bc1 | bc2 | g2 ]
                             #   +3: [be2 |  0  |  0 ]
N_ROWS = 2 * HIDDEN + 4      # 68


def _layer_norm(x, gamma, beta):
    u = jnp.mean(x, axis=-1, keepdims=True)
    s = jnp.mean((x - u) ** 2, axis=-1, keepdims=True)
    return gamma * ((x - u) / jnp.sqrt(s + EPS)) + beta


def sas_encoder_kernel(x_ref, mask_ref, p_ref, out_ref):
    # One batch row through all NUM_LAYERS layers.
    x = x_ref[0]          # (S, H)
    mask = mask_ref[0]    # (S, S) additive mask (0 / -1e4)

    # ---- unpack packed parameters (static slices, hoisted out of the layer loop) ----
    wqkv = p_ref[ROW_WQKV:ROW_WQKV + HIDDEN, :]     # (H, 3H): x @ wqkv -> [q | k | v]
    wout = p_ref[ROW_WOUT:ROW_WOUT + HIDDEN, :]     # (H, 3H)
    wd = wout[:, 0:HIDDEN]                          # attention output dense (pre-transposed)
    w1 = wout[:, HIDDEN:2 * HIDDEN]                 # FFN conv1 (k=1, pre-transposed)
    w2 = wout[:, 2 * HIDDEN:3 * HIDDEN]             # FFN conv2 (k=1, pre-transposed)
    vecs = p_ref[ROW_VECS:ROW_VECS + 4, :]          # (4, 3H) of biases / LN params
    bqkv = vecs[0:1, :]                             # (1, 3H)
    bd = vecs[1:2, 0:HIDDEN]
    g1 = vecs[1:2, HIDDEN:2 * HIDDEN]
    be1 = vecs[1:2, 2 * HIDDEN:3 * HIDDEN]
    bc1 = vecs[2:3, 0:HIDDEN]
    bc2 = vecs[2:3, HIDDEN:2 * HIDDEN]
    g2 = vecs[2:3, 2 * HIDDEN:3 * HIDDEN]
    be2 = vecs[3:4, 0:HIDDEN]

    scale = 1.0 / math.sqrt(HEAD_SIZE)

    def split_heads(t):   # (S, H) -> (HEADS, S, HEAD_SIZE); head = batch axis for einsum
        return jnp.stack(
            [t[:, i * HEAD_SIZE:(i + 1) * HEAD_SIZE] for i in range(HEADS)], axis=0)

    h = x
    for layer in range(NUM_LAYERS):       # deepcopy'd layers share identical parameters
        # --- SelfAttention: fused QKV projection (one MXU push + one bias add) ---
        qkv = jnp.dot(h, wqkv, preferred_element_type=jnp.float32) + bqkv   # (S, 3H)
        qh = split_heads(qkv[:, 0:HIDDEN])
        kh = split_heads(qkv[:, HIDDEN:2 * HIDDEN])
        vh = split_heads(qkv[:, 2 * HIDDEN:3 * HIDDEN])

        scores = jnp.einsum("nqd,nkd->nqk", qh, kh,
                            preferred_element_type=jnp.float32) * scale
        scores = scores + mask[None, :, :]
        m = jnp.max(scores, axis=-1, keepdims=True)
        e = jnp.exp(scores - m)
        probs = e / jnp.sum(e, axis=-1, keepdims=True)   # softmax(dim=-1); attn_dropout = id
        ctx_h = jnp.einsum("nqk,nkd->nqd", probs, vh,
                           preferred_element_type=jnp.float32)              # (HEADS, S, hd)
        ctx = jnp.concatenate([ctx_h[i] for i in range(HEADS)], axis=-1)    # (S, H)

        attn = jnp.dot(ctx, wd, preferred_element_type=jnp.float32) + bd    # out_dropout = id
        attn = _layer_norm(attn + h, g1, be1)

        # --- PointWiseFeedForward: Conv1d(k=1) == per-position linear; ReLU after BOTH convs
        #     (matches the PyTorch module), hidden_dropout = identity ---
        f1 = jnp.maximum(jnp.dot(attn, w1, preferred_element_type=jnp.float32) + bc1, 0.0)
        f2 = jnp.maximum(jnp.dot(f1, w2, preferred_element_type=jnp.float32) + bc2, 0.0)
        h = _layer_norm(f2 + attn, g2, be2)

        out_ref[layer, 0, :, :] = h


def pack_params(p):
    """Pack all 16 parameter tensors into one (N_ROWS, 3H) f32 buffer (single DMA)."""
    wqkv = jnp.concatenate([p["wq"].T, p["wk"].T, p["wv"].T], axis=1)      # (H, 3H)
    wout = jnp.concatenate([p["wd"].T, p["w1"].T, p["w2"].T], axis=1)      # (H, 3H)
    vec0 = jnp.concatenate([p["bq"], p["bk"], p["bv"]], axis=1)            # (1, 3H)
    vec1 = jnp.concatenate([p["bd"], p["g1"], p["be1"]], axis=1)
    vec2 = jnp.concatenate([p["bc1"], p["bc2"], p["g2"]], axis=1)
    vec3 = jnp.concatenate([p["be2"], jnp.zeros((1, 2 * HIDDEN), jnp.float32)], axis=1)
    return jnp.concatenate([wqkv, wout, vec0, vec1, vec2, vec3], axis=0)   # (N_ROWS, 3H)


def sas_encoder(hidden_states, attention_mask, params, output_all_encoded_layers=True):
    B, S, H = hidden_states.shape
    packed = pack_params(params)
    out = pl.pallas_call(
        sas_encoder_kernel,
        out_shape=jax.ShapeDtypeStruct((NUM_LAYERS, B, S, H), jnp.float32),
        grid=(B,),
        in_specs=[
            pl.BlockSpec((1, S, H), lambda b: (b, 0, 0)),        # hidden_states, per-batch tile
            pl.BlockSpec((1, S, S), lambda b: (b, 0, 0)),        # additive mask, per-batch tile
            pl.BlockSpec((N_ROWS, 3 * H), lambda b: (0, 0)),     # packed params, grid-invariant
        ],
        out_specs=pl.BlockSpec((NUM_LAYERS, 1, S, H), lambda b: (0, b, 0, 0)),
        compiler_params=pltpu.CompilerParams(dimension_semantics=("parallel",)),
    )(hidden_states, attention_mask, packed)
    if output_all_encoded_layers:
        return [out[i] for i in range(NUM_LAYERS)]
    return out[NUM_LAYERS - 1]


# --- pure-JAX reference for correctness check (mirrors the PyTorch module) ---
def _ref_layer(x, mask, p):
    q = x @ p["wq"].T + p["bq"][0]
    k = x @ p["wk"].T + p["bk"][0]
    v = x @ p["wv"].T + p["bv"][0]
    B, S, H = x.shape

    def split(t):
        return t.reshape(B, S, HEADS, HEAD_SIZE).transpose(0, 2, 1, 3)

    qh, kh, vh = split(q), split(k), split(v)
    scores = jnp.einsum("bhqd,bhkd->bhqk", qh, kh) / math.sqrt(HEAD_SIZE)
    scores = scores + mask[:, None, :, :]
    probs = jax.nn.softmax(scores, axis=-1)
    ctx = jnp.einsum("bhqk,bhkd->bhqd", probs, vh).transpose(0, 2, 1, 3).reshape(B, S, H)
    attn_out = ctx @ p["wd"].T + p["bd"][0]
    attn_out = _layer_norm(attn_out + x, p["g1"][0], p["be1"][0])
    h1 = jnp.maximum(attn_out @ p["w1"].T + p["bc1"][0], 0.0)
    h2 = jnp.maximum(h1 @ p["w2"].T + p["bc2"][0], 0.0)
    return _layer_norm(h2 + attn_out, p["g2"][0], p["be2"][0])


def _init_params(key):
    keys = jax.random.split(key, 8)
    scale = 0.05
    return {
        "wq": scale * jax.random.normal(keys[0], (HIDDEN, HIDDEN), jnp.float32),
        "bq": jnp.zeros((1, HIDDEN), jnp.float32),
        "wk": scale * jax.random.normal(keys[1], (HIDDEN, HIDDEN), jnp.float32),
        "bk": jnp.zeros((1, HIDDEN), jnp.float32),
        "wv": scale * jax.random.normal(keys[2], (HIDDEN, HIDDEN), jnp.float32),
        "bv": jnp.zeros((1, HIDDEN), jnp.float32),
        "wd": scale * jax.random.normal(keys[3], (HIDDEN, HIDDEN), jnp.float32),
        "bd": 0.01 * jax.random.normal(keys[4], (1, HIDDEN), jnp.float32),
        "g1": jnp.ones((1, HIDDEN), jnp.float32),
        "be1": jnp.zeros((1, HIDDEN), jnp.float32),
        # Conv1d(k=1) weights (H_out, H_in, 1) squeezed to (H_out, H_in)
        "w1": scale * jax.random.normal(keys[5], (HIDDEN, HIDDEN), jnp.float32),
        "bc1": 0.01 * jax.random.normal(keys[6], (1, HIDDEN), jnp.float32),
        "w2": scale * jax.random.normal(keys[7], (HIDDEN, HIDDEN), jnp.float32),
        "bc2": jnp.zeros((1, HIDDEN), jnp.float32),
        "g2": jnp.ones((1, HIDDEN), jnp.float32),
        "be2": jnp.zeros((1, HIDDEN), jnp.float32),
    }


if __name__ == "__main__":
    key = jax.random.PRNGKey(0)
    k_x, k_p = jax.random.split(key)

    hidden_states = jax.random.normal(k_x, (BATCH, SEQ, HIDDEN), jnp.float32)
    # causal additive attention mask: 0 where attended, -10000 otherwise
    causal = jnp.tril(jnp.ones((SEQ, SEQ), jnp.float32))
    attention_mask = jnp.broadcast_to((1.0 - causal) * -10000.0, (BATCH, SEQ, SEQ))

    params = _init_params(k_p)

    outs = sas_encoder(hidden_states, attention_mask, params,
                       output_all_encoded_layers=True)
    outs = [jax.block_until_ready(o) for o in outs]

    # reference check
    ref = hidden_states
    for i in range(NUM_LAYERS):
        ref = _ref_layer(ref, attention_mask, params)
        assert jnp.allclose(outs[i], ref, atol=1e-4, rtol=1e-4), f"mismatch at layer {i}"

    print("KERNEL_OK")
</pallas_src>

<mosaic_0001>
module attributes {stable_mosaic.version = 11 : i64} {
  func.func @sas_encoder_kernel(%arg0: i32, %arg1: memref<1x8x32xf32, #tpu.memory_space<vmem>>, %arg2: memref<1x8x8xf32, #tpu.memory_space<vmem>>, %arg3: memref<68x96xf32, #tpu.memory_space<vmem>>, %arg4: memref<2x1x8x32xf32, #tpu.memory_space<vmem>>) attributes {dimension_semantics = [#tpu.dimension_semantics<parallel>], iteration_bounds = array<i64: 2>, scalar_prefetch = 0 : i64, scratch_operands = 0 : i64, tpu.core_type = #tpu.core_type<tc>, window_params = [{transform_indices = @transform_0, window_bounds = array<i64: 1, 8, 32>}, {transform_indices = @transform_1, window_bounds = array<i64: 1, 8, 8>}, {pipeline_mode = #tpu.pipeline_mode<synchronous>, transform_indices = @transform_2, window_bounds = array<i64: 68, 96>}, {transform_indices = @transform_3, window_bounds = array<i64: 2, 1, 8, 32>}]} {
    %c0 = arith.constant 0 : index
    %c0_0 = arith.constant 0 : index
    %c0_1 = arith.constant 0 : index
    %0 = vector.load %arg1[%c0, %c0_0, %c0_1] : memref<1x8x32xf32, #tpu.memory_space<vmem>>, vector<1x8x32xf32>
    %1 = vector.shape_cast %0 : vector<1x8x32xf32> to vector<8x32xf32>
    %c0_2 = arith.constant 0 : index
    %c0_3 = arith.constant 0 : index
    %c0_4 = arith.constant 0 : index
    %2 = vector.load %arg2[%c0_2, %c0_3, %c0_4] : memref<1x8x8xf32, #tpu.memory_space<vmem>>, vector<1x8x8xf32>
    %3 = vector.shape_cast %2 : vector<1x8x8xf32> to vector<8x8xf32>
    %c0_5 = arith.constant 0 : index
    %c0_6 = arith.constant 0 : index
    %4 = vector.load %arg3[%c0_5, %c0_6] : memref<68x96xf32, #tpu.memory_space<vmem>>, vector<32x96xf32>
    %c32 = arith.constant 32 : index
    %c0_7 = arith.constant 0 : index
    %5 = vector.load %arg3[%c32, %c0_7] : memref<68x96xf32, #tpu.memory_space<vmem>>, vector<32x96xf32>
    %6 = vector.extract_strided_slice %5 {offsets = [0, 0], sizes = [32, 32], strides = [1, 1]} : vector<32x96xf32> to vector<32x32xf32>
    %7 = vector.extract_strided_slice %5 {offsets = [0, 32], sizes = [32, 32], strides = [1, 1]} : vector<32x96xf32> to vector<32x32xf32>
    %8 = vector.extract_strided_slice %5 {offsets = [0, 64], sizes = [32, 32], strides = [1, 1]} : vector<32x96xf32> to vector<32x32xf32>
    %c64 = arith.constant 64 : index
    %c0_8 = arith.constant 0 : index
    %9 = vector.load %arg3[%c64, %c0_8] : memref<68x96xf32, #tpu.memory_space<vmem>>, vector<4x96xf32>
    %10 = vector.extract_strided_slice %9 {offsets = [0, 0], sizes = [1, 96], strides = [1, 1]} : vector<4x96xf32> to vector<1x96xf32>
    %11 = vector.extract_strided_slice %9 {offsets = [1, 0], sizes = [1, 32], strides = [1, 1]} : vector<4x96xf32> to vector<1x32xf32>
    %12 = vector.extract_strided_slice %9 {offsets = [1, 32], sizes = [1, 32], strides = [1, 1]} : vector<4x96xf32> to vector<1x32xf32>
    %13 = vector.extract_strided_slice %9 {offsets = [1, 64], sizes = [1, 32], strides = [1, 1]} : vector<4x96xf32> to vector<1x32xf32>
    %14 = vector.extract_strided_slice %9 {offsets = [2, 0], sizes = [1, 32], strides = [1, 1]} : vector<4x96xf32> to vector<1x32xf32>
    %15 = vector.extract_strided_slice %9 {offsets = [2, 32], sizes = [1, 32], strides = [1, 1]} : vector<4x96xf32> to vector<1x32xf32>
    %16 = vector.extract_strided_slice %9 {offsets = [2, 64], sizes = [1, 32], strides = [1, 1]} : vector<4x96xf32> to vector<1x32xf32>
    %17 = vector.extract_strided_slice %9 {offsets = [3, 0], sizes = [1, 32], strides = [1, 1]} : vector<4x96xf32> to vector<1x32xf32>
    %cst = arith.constant dense<0.000000e+00> : vector<8x96xf32>
    %18 = tpu.matmul %1, %4, %cst {dimension_numbers = #tpu.dot_dimension_numbers<[1], [0], [0], [1], [0, 0, 1, 1], [], []>} : vector<8x32xf32>, vector<32x96xf32>, vector<8x96xf32> -> vector<8x96xf32>
    %19 = vector.broadcast %10 : vector<1x96xf32> to vector<8x96xf32>
    %20 = arith.addf %18, %19 : vector<8x96xf32>
    %21 = vector.extract_strided_slice %20 {offsets = [0, 0], sizes = [8, 32], strides = [1, 1]} : vector<8x96xf32> to vector<8x32xf32>
    %22 = vector.extract_strided_slice %21 {offsets = [0, 0], sizes = [8, 16], strides = [1, 1]} : vector<8x32xf32> to vector<8x16xf32>
    %23 = vector.extract_strided_slice %21 {offsets = [0, 16], sizes = [8, 16], strides = [1, 1]} : vector<8x32xf32> to vector<8x16xf32>
    %24 = vector.shape_cast %22 : vector<8x16xf32> to vector<1x8x16xf32>
    %25 = vector.shape_cast %23 : vector<8x16xf32> to vector<1x8x16xf32>
    %26 = tpu.concatenate %24, %25 in 0 : vector<1x8x16xf32>, vector<1x8x16xf32> -> vector<2x8x16xf32>
    %27 = vector.extract_strided_slice %20 {offsets = [0, 32], sizes = [8, 32], strides = [1, 1]} : vector<8x96xf32> to vector<8x32xf32>
    %28 = vector.extract_strided_slice %27 {offsets = [0, 0], sizes = [8, 16], strides = [1, 1]} : vector<8x32xf32> to vector<8x16xf32>
    %29 = vector.extract_strided_slice %27 {offsets = [0, 16], sizes = [8, 16], strides = [1, 1]} : vector<8x32xf32> to vector<8x16xf32>
    %30 = vector.shape_cast %28 : vector<8x16xf32> to vector<1x8x16xf32>
    %31 = vector.shape_cast %29 : vector<8x16xf32> to vector<1x8x16xf32>
    %32 = tpu.concatenate %30, %31 in 0 : vector<1x8x16xf32>, vector<1x8x16xf32> -> vector<2x8x16xf32>
    %33 = vector.extract_strided_slice %20 {offsets = [0, 64], sizes = [8, 32], strides = [1, 1]} : vector<8x96xf32> to vector<8x32xf32>
    %34 = vector.extract_strided_slice %33 {offsets = [0, 0], sizes = [8, 16], strides = [1, 1]} : vector<8x32xf32> to vector<8x16xf32>
    %35 = vector.extract_strided_slice %33 {offsets = [0, 16], sizes = [8, 16], strides = [1, 1]} : vector<8x32xf32> to vector<8x16xf32>
    %36 = vector.shape_cast %34 : vector<8x16xf32> to vector<1x8x16xf32>
    %37 = vector.shape_cast %35 : vector<8x16xf32> to vector<1x8x16xf32>
    %38 = tpu.concatenate %36, %37 in 0 : vector<1x8x16xf32>, vector<1x8x16xf32> -> vector<2x8x16xf32>
    "tpu.trace_start"() <{level = 10 : i32, message = "nqd,nkd->nqk"}> : () -> ()
    %cst_9 = arith.constant dense<0.000000e+00> : vector<2x8x8xf32>
    %39 = tpu.matmul %26, %32, %cst_9 {dimension_numbers = #tpu.dot_dimension_numbers<[2], [2], [1], [1], [0, 0, 0, 1, 1, 1], [0], [0]>} : vector<2x8x16xf32>, vector<2x8x16xf32>, vector<2x8x8xf32> -> vector<2x8x8xf32>
    "tpu.trace_stop"() : () -> ()
    %cst_10 = arith.constant 2.500000e-01 : f32
    %40 = vector.broadcast %cst_10 : f32 to vector<2x8x8xf32>
    %41 = arith.mulf %39, %40 : vector<2x8x8xf32>
    %42 = vector.shape_cast %3 : vector<8x8xf32> to vector<1x8x8xf32>
    %43 = vector.broadcast %42 : vector<1x8x8xf32> to vector<2x8x8xf32>
    %44 = arith.addf %41, %43 : vector<2x8x8xf32>
    %cst_11 = arith.constant dense<0xFF800000> : vector<2x8xf32>
    %45 = vector.multi_reduction <maximumf>, %44, %cst_11 [2] : vector<2x8x8xf32> to vector<2x8xf32>
    %46 = vector.shape_cast %45 : vector<2x8xf32> to vector<2x8x1xf32>
    %47 = vector.broadcast %46 : vector<2x8x1xf32> to vector<2x8x8xf32>
    %48 = arith.subf %44, %47 : vector<2x8x8xf32>
    %49 = math.exp %48 : vector<2x8x8xf32>
    %cst_12 = arith.constant dense<0.000000e+00> : vector<2x8xf32>
    %50 = vector.multi_reduction <add>, %49, %cst_12 [2] : vector<2x8x8xf32> to vector<2x8xf32>
    %51 = vector.shape_cast %50 : vector<2x8xf32> to vector<2x8x1xf32>
    %52 = vector.broadcast %51 : vector<2x8x1xf32> to vector<2x8x8xf32>
    %53 = arith.divf %49, %52 : vector<2x8x8xf32>
    "tpu.trace_start"() <{level = 10 : i32, message = "nqk,nkd->nqd"}> : () -> ()
    %cst_13 = arith.constant dense<0.000000e+00> : vector<2x8x16xf32>
    %54 = tpu.matmul %53, %38, %cst_13 {dimension_numbers = #tpu.dot_dimension_numbers<[2], [1], [1], [2], [0, 0, 0, 1, 1, 2], [0], [0]>} : vector<2x8x8xf32>, vector<2x8x16xf32>, vector<2x8x16xf32> -> vector<2x8x16xf32>
    "tpu.trace_stop"() : () -> ()
    %55 = vector.extract_strided_slice %54 {offsets = [0, 0, 0], sizes = [1, 8, 16], strides = [1, 1, 1]} : vector<2x8x16xf32> to vector<1x8x16xf32>
    %56 = vector.shape_cast %55 : vector<1x8x16xf32> to vector<8x16xf32>
    %57 = vector.extract_strided_slice %54 {offsets = [1, 0, 0], sizes = [1, 8, 16], strides = [1, 1, 1]} : vector<2x8x16xf32> to vector<1x8x16xf32>
    %58 = vector.shape_cast %57 : vector<1x8x16xf32> to vector<8x16xf32>
    %59 = tpu.concatenate %56, %58 in 1 : vector<8x16xf32>, vector<8x16xf32> -> vector<8x32xf32>
    %cst_14 = arith.constant dense<0.000000e+00> : vector<8x32xf32>
    %60 = tpu.matmul %59, %6, %cst_14 {dimension_numbers = #tpu.dot_dimension_numbers<[1], [0], [0], [1], [0, 0, 1, 1], [], []>} : vector<8x32xf32>, vector<32x32xf32>, vector<8x32xf32> -> vector<8x32xf32>
    %61 = vector.broadcast %11 : vector<1x32xf32> to vector<8x32xf32>
    %62 = arith.addf %60, %61 : vector<8x32xf32>
    %63 = arith.addf %62, %1 : vector<8x32xf32>
    %cst_15 = arith.constant dense<0.000000e+00> : vector<8xf32>
    %64 = vector.multi_reduction <add>, %63, %cst_15 [1] : vector<8x32xf32> to vector<8xf32>
    %65 = vector.shape_cast %64 : vector<8xf32> to vector<8x1xf32>
    %cst_16 = arith.constant 3.200000e+01 : f32
    %66 = vector.broadcast %cst_16 : f32 to vector<8x1xf32>
    %67 = arith.divf %65, %66 : vector<8x1xf32>
    %68 = vector.broadcast %67 : vector<8x1xf32> to vector<8x32xf32>
    %69 = arith.subf %63, %68 : vector<8x32xf32>
    %70 = arith.mulf %69, %69 : vector<8x32xf32>
    %cst_17 = arith.constant dense<0.000000e+00> : vector<8xf32>
    %71 = vector.multi_reduction <add>, %70, %cst_17 [1] : vector<8x32xf32> to vector<8xf32>
    %72 = vector.shape_cast %71 : vector<8xf32> to vector<8x1xf32>
    %cst_18 = arith.constant 3.200000e+01 : f32
    %73 = vector.broadcast %cst_18 : f32 to vector<8x1xf32>
    %74 = arith.divf %72, %73 : vector<8x1xf32>
    %75 = vector.broadcast %67 : vector<8x1xf32> to vector<8x32xf32>
    %76 = arith.subf %63, %75 : vector<8x32xf32>
    %cst_19 = arith.constant 9.99999996E-13 : f32
    %77 = vector.broadcast %cst_19 : f32 to vector<8x1xf32>
    %78 = arith.addf %74, %77 : vector<8x1xf32>
    %79 = math.sqrt %78 : vector<8x1xf32>
    %80 = vector.broadcast %79 : vector<8x1xf32> to vector<8x32xf32>
    %81 = arith.divf %76, %80 : vector<8x32xf32>
    %82 = vector.broadcast %12 : vector<1x32xf32> to vector<8x32xf32>
    %83 = arith.mulf %82, %81 : vector<8x32xf32>
    %84 = vector.broadcast %13 : vector<1x32xf32> to vector<8x32xf32>
    %85 = arith.addf %83, %84 : vector<8x32xf32>
    %cst_20 = arith.constant dense<0.000000e+00> : vector<8x32xf32>
    %86 = tpu.matmul %85, %7, %cst_20 {dimension_numbers = #tpu.dot_dimension_numbers<[1], [0], [0], [1], [0, 0, 1, 1], [], []>} : vector<8x32xf32>, vector<32x32xf32>, vector<8x32xf32> -> vector<8x32xf32>
    %87 = vector.broadcast %14 : vector<1x32xf32> to vector<8x32xf32>
    %88 = arith.addf %86, %87 : vector<8x32xf32>
    %cst_21 = arith.constant 0.000000e+00 : f32
    %89 = vector.broadcast %cst_21 : f32 to vector<8x32xf32>
    %90 = arith.maximumf %88, %89 : vector<8x32xf32>
    %cst_22 = arith.constant dense<0.000000e+00> : vector<8x32xf32>
    %91 = tpu.matmul %90, %8, %cst_22 {dimension_numbers = #tpu.dot_dimension_numbers<[1], [0], [0], [1], [0, 0, 1, 1], [], []>} : vector<8x32xf32>, vector<32x32xf32>, vector<8x32xf32> -> vector<8x32xf32>
    %92 = vector.broadcast %15 : vector<1x32xf32> to vector<8x32xf32>
    %93 = arith.addf %91, %92 : vector<8x32xf32>
    %cst_23 = arith.constant 0.000000e+00 : f32
    %94 = vector.broadcast %cst_23 : f32 to vector<8x32xf32>
    %95 = arith.maximumf %93, %94 : vector<8x32xf32>
    %96 = arith.addf %95, %85 : vector<8x32xf32>
    %cst_24 = arith.constant dense<0.000000e+00> : vector<8xf32>
    %97 = vector.multi_reduction <add>, %96, %cst_24 [1] : vector<8x32xf32> to vector<8xf32>
    %98 = vector.shape_cast %97 : vector<8xf32> to vector<8x1xf32>
    %cst_25 = arith.constant 3.200000e+01 : f32
    %99 = vector.broadcast %cst_25 : f32 to vector<8x1xf32>
    %100 = arith.divf %98, %99 : vector<8x1xf32>
    %101 = vector.broadcast %100 : vector<8x1xf32> to vector<8x32xf32>
    %102 = arith.subf %96, %101 : vector<8x32xf32>
    %103 = arith.mulf %102, %102 : vector<8x32xf32>
    %cst_26 = arith.constant dense<0.000000e+00> : vector<8xf32>
    %104 = vector.multi_reduction <add>, %103, %cst_26 [1] : vector<8x32xf32> to vector<8xf32>
    %105 = vector.shape_cast %104 : vector<8xf32> to vector<8x1xf32>
    %cst_27 = arith.constant 3.200000e+01 : f32
    %106 = vector.broadcast %cst_27 : f32 to vector<8x1xf32>
    %107 = arith.divf %105, %106 : vector<8x1xf32>
    %108 = vector.broadcast %100 : vector<8x1xf32> to vector<8x32xf32>
    %109 = arith.subf %96, %108 : vector<8x32xf32>
    %cst_28 = arith.constant 9.99999996E-13 : f32
    %110 = vector.broadcast %cst_28 : f32 to vector<8x1xf32>
    %111 = arith.addf %107, %110 : vector<8x1xf32>
    %112 = math.sqrt %111 : vector<8x1xf32>
    %113 = vector.broadcast %112 : vector<8x1xf32> to vector<8x32xf32>
    %114 = arith.divf %109, %113 : vector<8x32xf32>
    %115 = vector.broadcast %16 : vector<1x32xf32> to vector<8x32xf32>
    %116 = arith.mulf %115, %114 : vector<8x32xf32>
    %117 = vector.broadcast %17 : vector<1x32xf32> to vector<8x32xf32>
    %118 = arith.addf %116, %117 : vector<8x32xf32>
    %c0_29 = arith.constant 0 : index
    %c0_30 = arith.constant 0 : index
    %c0_31 = arith.constant 0 : index
    %c0_32 = arith.constant 0 : index
    %119 = vector.load %arg4[%c0_29, %c0_30, %c0_31, %c0_32] : memref<2x1x8x32xf32, #tpu.memory_space<vmem>>, vector<1x1x8x32xf32>
    %120 = vector.shape_cast %119 : vector<1x1x8x32xf32> to vector<8x32xf32>
    %121 = vector.shape_cast %118 : vector<8x32xf32> to vector<1x1x8x32xf32>
    tpu.vector_store %arg4[%c0_29, %c0_30, %c0_31, %c0_32], %121 {strides = array<i32>} : memref<2x1x8x32xf32, #tpu.memory_space<vmem>>, vector<1x1x8x32xf32>,
    %cst_33 = arith.constant dense<0.000000e+00> : vector<8x96xf32>
    %122 = tpu.matmul %118, %4, %cst_33 {dimension_numbers = #tpu.dot_dimension_numbers<[1], [0], [0], [1], [0, 0, 1, 1], [], []>} : vector<8x32xf32>, vector<32x96xf32>, vector<8x96xf32> -> vector<8x96xf32>
    %123 = vector.broadcast %10 : vector<1x96xf32> to vector<8x96xf32>
    %124 = arith.addf %122, %123 : vector<8x96xf32>
    %125 = vector.extract_strided_slice %124 {offsets = [0, 0], sizes = [8, 32], strides = [1, 1]} : vector<8x96xf32> to vector<8x32xf32>
    %126 = vector.extract_strided_slice %125 {offsets = [0, 0], sizes = [8, 16], strides = [1, 1]} : vector<8x32xf32> to vector<8x16xf32>
    %127 = vector.extract_strided_slice %125 {offsets = [0, 16], sizes = [8, 16], strides = [1, 1]} : vector<8x32xf32> to vector<8x16xf32>
    %128 = vector.shape_cast %126 : vector<8x16xf32> to vector<1x8x16xf32>
    %129 = vector.shape_cast %127 : vector<8x16xf32> to vector<1x8x16xf32>
    %130 = tpu.concatenate %128, %129 in 0 : vector<1x8x16xf32>, vector<1x8x16xf32> -> vector<2x8x16xf32>
    %131 = vector.extract_strided_slice %124 {offsets = [0, 32], sizes = [8, 32], strides = [1, 1]} : vector<8x96xf32> to vector<8x32xf32>
    %132 = vector.extract_strided_slice %131 {offsets = [0, 0], sizes = [8, 16], strides = [1, 1]} : vector<8x32xf32> to vector<8x16xf32>
    %133 = vector.extract_strided_slice %131 {offsets = [0, 16], sizes = [8, 16], strides = [1, 1]} : vector<8x32xf32> to vector<8x16xf32>
    %134 = vector.shape_cast %132 : vector<8x16xf32> to vector<1x8x16xf32>
    %135 = vector.shape_cast %133 : vector<8x16xf32> to vector<1x8x16xf32>
    %136 = tpu.concatenate %134, %135 in 0 : vector<1x8x16xf32>, vector<1x8x16xf32> -> vector<2x8x16xf32>
    %137 = vector.extract_strided_slice %124 {offsets = [0, 64], sizes = [8, 32], strides = [1, 1]} : vector<8x96xf32> to vector<8x32xf32>
    %138 = vector.extract_strided_slice %137 {offsets = [0, 0], sizes = [8, 16], strides = [1, 1]} : vector<8x32xf32> to vector<8x16xf32>
    %139 = vector.extract_strided_slice %137 {offsets = [0, 16], sizes = [8, 16], strides = [1, 1]} : vector<8x32xf32> to vector<8x16xf32>
    %140 = vector.shape_cast %138 : vector<8x16xf32> to vector<1x8x16xf32>
    %141 = vector.shape_cast %139 : vector<8x16xf32> to vector<1x8x16xf32>
    %142 = tpu.concatenate %140, %141 in 0 : vector<1x8x16xf32>, vector<1x8x16xf32> -> vector<2x8x16xf32>
    "tpu.trace_start"() <{level = 10 : i32, message = "nqd,nkd->nqk"}> : () -> ()
    %cst_34 = arith.constant dense<0.000000e+00> : vector<2x8x8xf32>
    %143 = tpu.matmul %130, %136, %cst_34 {dimension_numbers = #tpu.dot_dimension_numbers<[2], [2], [1], [1], [0, 0, 0, 1, 1, 1], [0], [0]>} : vector<2x8x16xf32>, vector<2x8x16xf32>, vector<2x8x8xf32> -> vector<2x8x8xf32>
    "tpu.trace_stop"() : () -> ()
    %cst_35 = arith.constant 2.500000e-01 : f32
    %144 = vector.broadcast %cst_35 : f32 to vector<2x8x8xf32>
    %145 = arith.mulf %143, %144 : vector<2x8x8xf32>
    %146 = vector.shape_cast %3 : vector<8x8xf32> to vector<1x8x8xf32>
    %147 = vector.broadcast %146 : vector<1x8x8xf32> to vector<2x8x8xf32>
    %148 = arith.addf %145, %147 : vector<2x8x8xf32>
    %cst_36 = arith.constant dense<0xFF800000> : vector<2x8xf32>
    %149 = vector.multi_reduction <maximumf>, %148, %cst_36 [2] : vector<2x8x8xf32> to vector<2x8xf32>
    %150 = vector.shape_cast %149 : vector<2x8xf32> to vector<2x8x1xf32>
    %151 = vector.broadcast %150 : vector<2x8x1xf32> to vector<2x8x8xf32>
    %152 = arith.subf %148, %151 : vector<2x8x8xf32>
    %153 = math.exp %152 : vector<2x8x8xf32>
    %cst_37 = arith.constant dense<0.000000e+00> : vector<2x8xf32>
    %154 = vector.multi_reduction <add>, %153, %cst_37 [2] : vector<2x8x8xf32> to vector<2x8xf32>
    %155 = vector.shape_cast %154 : vector<2x8xf32> to vector<2x8x1xf32>
    %156 = vector.broadcast %155 : vector<2x8x1xf32> to vector<2x8x8xf32>
    %157 = arith.divf %153, %156 : vector<2x8x8xf32>
    "tpu.trace_start"() <{level = 10 : i32, message = "nqk,nkd->nqd"}> : () -> ()
    %cst_38 = arith.constant dense<0.000000e+00> : vector<2x8x16xf32>
    %158 = tpu.matmul %157, %142, %cst_38 {dimension_numbers = #tpu.dot_dimension_numbers<[2], [1], [1], [2], [0, 0, 0, 1, 1, 2], [0], [0]>} : vector<2x8x8xf32>, vector<2x8x16xf32>, vector<2x8x16xf32> -> vector<2x8x16xf32>
    "tpu.trace_stop"() : () -> ()
    %159 = vector.extract_strided_slice %158 {offsets = [0, 0, 0], sizes = [1, 8, 16], strides = [1, 1, 1]} : vector<2x8x16xf32> to vector<1x8x16xf32>
    %160 = vector.shape_cast %159 : vector<1x8x16xf32> to vector<8x16xf32>
    %161 = vector.extract_strided_slice %158 {offsets = [1, 0, 0], sizes = [1, 8, 16], strides = [1, 1, 1]} : vector<2x8x16xf32> to vector<1x8x16xf32>
    %162 = vector.shape_cast %161 : vector<1x8x16xf32> to vector<8x16xf32>
    %163 = tpu.concatenate %160, %162 in 1 : vector<8x16xf32>, vector<8x16xf32> -> vector<8x32xf32>
    %cst_39 = arith.constant dense<0.000000e+00> : vector<8x32xf32>
    %164 = tpu.matmul %163, %6, %cst_39 {dimension_numbers = #tpu.dot_dimension_numbers<[1], [0], [0], [1], [0, 0, 1, 1], [], []>} : vector<8x32xf32>, vector<32x32xf32>, vector<8x32xf32> -> vector<8x32xf32>
    %165 = vector.broadcast %11 : vector<1x32xf32> to vector<8x32xf32>
    %166 = arith.addf %164, %165 : vector<8x32xf32>
    %167 = arith.addf %166, %118 : vector<8x32xf32>
    %cst_40 = arith.constant dense<0.000000e+00> : vector<8xf32>
    %168 = vector.multi_reduction <add>, %167, %cst_40 [1] : vector<8x32xf32> to vector<8xf32>
    %169 = vector.shape_cast %168 : vector<8xf32> to vector<8x1xf32>
    %cst_41 = arith.constant 3.200000e+01 : f32
    %170 = vector.broadcast %cst_41 : f32 to vector<8x1xf32>
    %171 = arith.divf %169, %170 : vector<8x1xf32>
    %172 = vector.broadcast %171 : vector<8x1xf32> to vector<8x32xf32>
    %173 = arith.subf %167, %172 : vector<8x32xf32>
    %174 = arith.mulf %173, %173 : vector<8x32xf32>
    %cst_42 = arith.constant dense<0.000000e+00> : vector<8xf32>
    %175 = vector.multi_reduction <add>, %174, %cst_42 [1] : vector<8x32xf32> to vector<8xf32>
    %176 = vector.shape_cast %175 : vector<8xf32> to vector<8x1xf32>
    %cst_43 = arith.constant 3.200000e+01 : f32
    %177 = vector.broadcast %cst_43 : f32 to vector<8x1xf32>
    %178 = arith.divf %176, %177 : vector<8x1xf32>
    %179 = vector.broadcast %171 : vector<8x1xf32> to vector<8x32xf32>
    %180 = arith.subf %167, %179 : vector<8x32xf32>
    %cst_44 = arith.constant 9.99999996E-13 : f32
    %181 = vector.broadcast %cst_44 : f32 to vector<8x1xf32>
    %182 = arith.addf %178, %181 : vector<8x1xf32>
    %183 = math.sqrt %182 : vector<8x1xf32>
    %184 = vector.broadcast %183 : vector<8x1xf32> to vector<8x32xf32>
    %185 = arith.divf %180, %184 : vector<8x32xf32>
    %186 = vector.broadcast %12 : vector<1x32xf32> to vector<8x32xf32>
    %187 = arith.mulf %186, %185 : vector<8x32xf32>
    %188 = vector.broadcast %13 : vector<1x32xf32> to vector<8x32xf32>
    %189 = arith.addf %187, %188 : vector<8x32xf32>
    %cst_45 = arith.constant dense<0.000000e+00> : vector<8x32xf32>
    %190 = tpu.matmul %189, %7, %cst_45 {dimension_numbers = #tpu.dot_dimension_numbers<[1], [0], [0], [1], [0, 0, 1, 1], [], []>} : vector<8x32xf32>, vector<32x32xf32>, vector<8x32xf32> -> vector<8x32xf32>
    %191 = vector.broadcast %14 : vector<1x32xf32> to vector<8x32xf32>
    %192 = arith.addf %190, %191 : vector<8x32xf32>
    %cst_46 = arith.constant 0.000000e+00 : f32
    %193 = vector.broadcast %cst_46 : f32 to vector<8x32xf32>
    %194 = arith.maximumf %192, %193 : vector<8x32xf32>
    %cst_47 = arith.constant dense<0.000000e+00> : vector<8x32xf32>
    %195 = tpu.matmul %194, %8, %cst_47 {dimension_numbers = #tpu.dot_dimension_numbers<[1], [0], [0], [1], [0, 0, 1, 1], [], []>} : vector<8x32xf32>, vector<32x32xf32>, vector<8x32xf32> -> vector<8x32xf32>
    %196 = vector.broadcast %15 : vector<1x32xf32> to vector<8x32xf32>
    %197 = arith.addf %195, %196 : vector<8x32xf32>
    %cst_48 = arith.constant 0.000000e+00 : f32
    %198 = vector.broadcast %cst_48 : f32 to vector<8x32xf32>
    %199 = arith.maximumf %197, %198 : vector<8x32xf32>
    %200 = arith.addf %199, %189 : vector<8x32xf32>
    %cst_49 = arith.constant dense<0.000000e+00> : vector<8xf32>
    %201 = vector.multi_reduction <add>, %200, %cst_49 [1] : vector<8x32xf32> to vector<8xf32>
    %202 = vector.shape_cast %201 : vector<8xf32> to vector<8x1xf32>
    %cst_50 = arith.constant 3.200000e+01 : f32
    %203 = vector.broadcast %cst_50 : f32 to vector<8x1xf32>
    %204 = arith.divf %202, %203 : vector<8x1xf32>
    %205 = vector.broadcast %204 : vector<8x1xf32> to vector<8x32xf32>
    %206 = arith.subf %200, %205 : vector<8x32xf32>
    %207 = arith.mulf %206, %206 : vector<8x32xf32>
    %cst_51 = arith.constant dense<0.000000e+00> : vector<8xf32>
    %208 = vector.multi_reduction <add>, %207, %cst_51 [1] : vector<8x32xf32> to vector<8xf32>
    %209 = vector.shape_cast %208 : vector<8xf32> to vector<8x1xf32>
    %cst_52 = arith.constant 3.200000e+01 : f32
    %210 = vector.broadcast %cst_52 : f32 to vector<8x1xf32>
    %211 = arith.divf %209, %210 : vector<8x1xf32>
    %212 = vector.broadcast %204 : vector<8x1xf32> to vector<8x32xf32>
    %213 = arith.subf %200, %212 : vector<8x32xf32>
    %cst_53 = arith.constant 9.99999996E-13 : f32
    %214 = vector.broadcast %cst_53 : f32 to vector<8x1xf32>
    %215 = arith.addf %211, %214 : vector<8x1xf32>
    %216 = math.sqrt %215 : vector<8x1xf32>
    %217 = vector.broadcast %216 : vector<8x1xf32> to vector<8x32xf32>
    %218 = arith.divf %213, %217 : vector<8x32xf32>
    %219 = vector.broadcast %16 : vector<1x32xf32> to vector<8x32xf32>
    %220 = arith.mulf %219, %218 : vector<8x32xf32>
    %221 = vector.broadcast %17 : vector<1x32xf32> to vector<8x32xf32>
    %222 = arith.addf %220, %221 : vector<8x32xf32>
    %c1 = arith.constant 1 : index
    %c0_54 = arith.constant 0 : index
    %c0_55 = arith.constant 0 : index
    %c0_56 = arith.constant 0 : index
    %223 = vector.load %arg4[%c1, %c0_54, %c0_55, %c0_56] : memref<2x1x8x32xf32, #tpu.memory_space<vmem>>, vector<1x1x8x32xf32>
    %224 = vector.shape_cast %223 : vector<1x1x8x32xf32> to vector<8x32xf32>
    %225 = vector.shape_cast %222 : vector<8x32xf32> to vector<1x1x8x32xf32>
    tpu.vector_store %arg4[%c1, %c0_54, %c0_55, %c0_56], %225 {strides = array<i32>} : memref<2x1x8x32xf32, #tpu.memory_space<vmem>>, vector<1x1x8x32xf32>,
    return
  }
  func.func @transform_0(%arg0: i32) -> (i32, i32, i32) {
    %c0_i32 = arith.constant 0 : i32
    %c0_i32_0 = arith.constant 0 : i32
    %c0_i32_1 = arith.constant 0 : i32
    return %arg0, %c0_i32, %c0_i32_0 : i32, i32, i32
  }
  func.func @transform_1(%arg0: i32) -> (i32, i32, i32) {
    %c0_i32 = arith.constant 0 : i32
    %c0_i32_0 = arith.constant 0 : i32
    %c0_i32_1 = arith.constant 0 : i32
    return %arg0, %c0_i32, %c0_i32_0 : i32, i32, i32
  }
  func.func @transform_2(%arg0: i32) -> (i32, i32) {
    %c0_i32 = arith.constant 0 : i32
    %c0_i32_0 = arith.constant 0 : i32
    %c0_i32_1 = arith.constant 0 : i32
    return %c0_i32, %c0_i32_0 : i32, i32
  }
  func.func @transform_3(%arg0: i32) -> (i32, i32, i32, i32) {
    %c0_i32 = arith.constant 0 : i32
    %c0_i32_0 = arith.constant 0 : i32
    %c0_i32_1 = arith.constant 0 : i32
    %c0_i32_2 = arith.constant 0 : i32
    return %c0_i32, %arg0, %c0_i32_0, %c0_i32_1 : i32, i32, i32, i32
  }
}

</mosaic_0001>

<bundles_post_ra>
// kernel: tpu_custom_call.1
= control target key start
LH: loop header
LB: loop body
LE: loop exit
PB: predicated region body
PF: predicated region fallthrough
CT: control target
= control target key end

     0   :  { %8 = vsyncpa [#allocation3], 0  ;;  %s2865_s0 = inlined_call_operand.hbm [shape: f32[2,8,32], index: 0, kind: input, shape index: {}]   ;;  %s2866_s1 = inlined_call_operand.hbm [shape: f32[2,8,8], index: 1, kind: input, shape index: {}]   ;;  %s2867_s2 = inlined_call_operand.hbm [shape: f32[68,96], index: 2, kind: input, shape index: {}]   ;;  %s2868_s3 = inlined_call_operand.hbm [shape: f32[2,2,8,32], index: 3, kind: output, shape index: {}]  }
   0x1   :  { %10 = vsyncpa [#allocation3 + $0x1], 0 }
   0x2   :  { %11 = vsyncpa [#allocation6], 0 }
   0x3   :  { %13 = vsyncpa [#allocation6 + $0x1], 0 }
   0x4   :  { %14 = vsyncpa [#allocation4], 0 }
   0x5   :  { %16 = vsyncpa [#allocation4 + $0x1], 0  ;;  %s2412_s12 = smov 0   ;;  %s2414_s13 = smov 0  }
   0x6   :  { %s2416_s14 = smov 0   ;;  %s2418_s15 = smov 0  }
   0x7 LB: > { %s2433_s16 = sadd.s32 4294967295, %s2373_s15   ;;  %s1814_s17 = sadd.s32 4294967294, %s2373_s15   ;;  %s2373_s15 = sphi %s2418_s15, %s2890_s15   ;;  %s2369_s14 = sphi %s2416_s14, %s2889_s14   ;;  %s2365_s13 = sphi %s2414_s13, %s2888_s13   ;;  %s2361_s12 = sphi %s2412_s12, %s2887_s12  }
   0x8   : > { %p42_p0 = scmp.ne.s32.totalorder %s2365_s13, %s2361_s12  ;;  %p2869_p1 = scmp.eq.s32.totalorder %s2433_s16, 0 }
   0x9   : > { %p119_p3 = scmp.eq.s32.totalorder %s1814_s17, 1  ;;  %p1815_p5 = scmp.ge.s32.totalorder %s2373_s15, 1 }
   0xa   : > { %p2442_p4 = por %p2869_p1, %p42_p0  ;;  %p126_p7 = scmp.lt.s32.totalorder %s2373_s15, 3 }
   0xb   : > { %p2447_p6 = por %p119_p3, %p42_p0  ;;  %s2375_s21 = smov [#allocation7]  }
   0xc   : > { %s2873_s18 = scalar_select %p2442_p4, 1, 0 }
   0xd   : > { %s2874_s19 = scalar_select %p2447_p6, 1, 0 }
   0xe   : > { %p2452_p8 = pnand %p1815_p5, %p126_p7  ;;  %s138_s22 = sshll.u32 %s2375_s21, 4  ;;  %s2456_s22 = int_to_ptr.vmem [resolvable:$true] %s138_s22 }
   0xf   : > { %s2468_s24 = sadd.s32 1, %s2373_s15   ;;  %s29_s25 = sadd.s32 1, %s2369_s14 }
  0x10   : > { %s2875_s20 = scalar_select %p2452_p8, 1, 0 }
  0x11   : > { %p2094_p9 = pneg %p2452_p8  ;;  %s26_s26 = ssub.s32 %s2373_s15, %s2468_s24 }
  0x12   : > { %s2211_s29 = scalar_lea.hbm %s2867_s2, 1152 }
  0x13   : > { %p2463_p11 = pnand %p2094_p9, %p2869_p1  ;;  %p2212_p12 = scmp.ne.s32.totalorder %s2867_s2, %s2211_s29 }
  0x14   : > { %p2218_p5 = scmp.lt.u32.totalorder %s2211_s29, %s2867_s2 }
  0x15   : > { %p2213_p13 = pneg %p2463_p11 }
  0x17   : > { %p2214_p0 = pnand %p2213_p13, %p2212_p12 }
  0x19   : > { %p2215_p3 = pneg %p2214_p0 }
  0x1b   : > { %p2220_p7 = pnand %p2218_p5, %p2215_p3 }
  0x1d   : > { %2223 = shalt.err (!%p2220_p7)
}
  0x1e   : > { %s2224_s7 = scalar_lea.vmem %s2456_s22, 1152  ;;  %p2232_p2 = scmp.lt.s32.totalorder %s2456_s22, %s2456_s22 }
  0x1f   : > { %p2225_p9 = scmp.ne.s32.totalorder %s2456_s22, %s2224_s7  ;;  %p2233_p6 = scmp.lt.s32.totalorder %s2224_s7, %s2224_s7 }
  0x21   : > { %p2227_p10 = pnand %p2225_p9, %p2213_p13  ;;  %p2234_p4 = por %p2233_p6, %p2232_p2 }
  0x23   : > { %p2228_p1 = pneg %p2227_p10 }
  0x25   : > { %p2235_p8 = pnand %p2234_p4, %p2228_p1 }
  0x27   : > { %2238 = shalt.err (!%p2235_p8)
}
  0x28   : > { %s2376_s8 = smov 128   ;;  %s2377_s9 = smov 8  }
  0x29   : > { %2097 = dma.hbm_to_vmem [thread:$0]  (!%p2463_p11), %s2867_s2, 1152, %s2456_s22, [#allocation6], %s2376_s8, %s2376_s8, %s2377_s9  }
  0x2a   : > { %p27_p2 = scmp.eq.s32.totalorder %s26_s26, 0  ;;  %p36_p1 = scmp.ne.s32.totalorder %s2369_s14, %s2365_s13 }
  0x2b   : > { %p37_p4 = scmp.eq.s32.totalorder %s2373_s15, 0  ;;  %p2110_p6 = scmp.lt.s32.totalorder %s2373_s15, 2 }
  0x2c   : > { %s2499_s17 = scalar_select %p27_p2, %s2369_s14, %s29_s25  }
  0x2d   : > { %p38_p8 = por %p37_p4, %p36_p1  ;;  %p2877_p10 = scmp.eq.s32.totalorder %s2433_s16, 1 }
  0x2e   : > { %s152_s27 = sand.u32 1, %s2369_s14   ;;  %s1819_s28 = sshll.u32 %s2373_s15, 7 }
  0x2f   : > { %p2503_p12 = por %p2877_p10, %p36_p1  ;;  %s2509_s29 = sshll.u32 %s152_s27, 3 }
  0x30   : > { %s2514_s22 = scalar_lea.hbm %s2865_s0, %s1819_s28  ;;  %s156_s25 = scalar_lea.vmem [#allocation2], %s2509_s29 }
  0x31   : > { %s2878_s21 = scalar_select %p2503_p12, 1, 0 }
  0x32   : > { %s163_s26 = sshll.u32 %s156_s25, 4  ;;  %p2517_p11 = pnand %p2110_p6, %p38_p8  ;;  %s2521_s26 = int_to_ptr.vmem [resolvable:$true] %s163_s26 }
  0x33   : > { %s2526_s7 = scalar_lea.hbm %s2866_s1, %s1819_s28  ;;  %s153_s8 = scalar_lea.sflag [#allocation3], %s152_s27 }
  0x34   : > { %s2239_s9 = scalar_lea.hbm %s2514_s22, 128  ;;  %p2241_p0 = pneg %p2517_p11 }
  0x35   : > { %p2240_p13 = scmp.ne.s32.totalorder %s2514_s22, %s2239_s9  ;;  %s2244_s23 = scalar_lea.hbm %s2865_s0, 256 }
  0x36   : > { %p2245_p7 = scmp.lt.u32.totalorder %s2514_s22, %s2865_s0  ;;  %p2246_p9 = scmp.lt.u32.totalorder %s2244_s23, %s2239_s9 }
  0x37   : > { %p2242_p3 = pnand %p2241_p0, %p2240_p13  ;;  %p2248_p1 = scmp.lt.u32.totalorder %s2239_s9, %s2514_s22 }
  0x38   : > { %p2247_p2 = por %p2246_p9, %p2245_p7 }
  0x39   : > { %p2243_p5 = pneg %p2242_p3 }
  0x3a   : > { %p2249_p4 = por %p2248_p1, %p2247_p2 }
  0x3c   : > { %p2250_p6 = pnand %p2249_p4, %p2243_p5 }
  0x3e   : > { %2253 = shalt.err (!%p2250_p6)
}
  0x3f   : > { %s2254_s27 = scalar_lea.vmem %s2521_s26, 128  ;;  %s2378_s28 = smov [#allocation2]  }
  0x40   : > { %p2255_p8 = scmp.ne.s32.totalorder %s2521_s26, %s2254_s27  ;;  %s2259_s5 = sshll.u32 %s2378_s28, 4  ;;  %s2260_s5 = int_to_ptr.vmem [resolvable:$false] %s2259_s5 }
  0x41   : > { %s2261_s6 = scalar_lea.vmem %s2260_s5, 256  ;;  %p2262_p3 = scmp.lt.s32.totalorder %s2521_s26, %s2260_s5 }
  0x42   : > { %p2257_p10 = pnand %p2255_p8, %p2241_p0  ;;  %p2263_p7 = scmp.lt.s32.totalorder %s2261_s6, %s2254_s27 }
  0x44   : > { %p2258_p13 = pneg %p2257_p10  ;;  %p2264_p9 = por %p2263_p7, %p2262_p3 }
  0x46   : > { %p2265_p2 = pnand %p2264_p9, %p2258_p13 }
  0x48   : > { %2268 = shalt.err (!%p2265_p2)
}
  0x49   : > { %2101 = dma.hbm_to_vmem [thread:$0]  (!%p2517_p11), %s2514_s22, 128, %s2521_s26, %s153_s8  }
  0x4a   : > { %s170_s9 = sand.u32 1, %s2373_s15   ;;  %s174_s10 = scalar_lea.vmem [#allocation5], %s2509_s29 }
  0x4b   : > { %s181_s11 = sshll.u32 %s174_s10, 4  ;;  %s171_s23 = scalar_lea.sflag [#allocation6], %s170_s9  ;;  %s182_s11 = int_to_ptr.vmem [resolvable:$true] %s181_s11 }
  0x4c   : > { %s2269_s30 = scalar_lea.hbm %s2526_s7, 128  ;;  %s2274_s28 = scalar_lea.hbm %s2866_s1, 256 }
  0x4d   : > { %p2270_p5 = scmp.ne.s32.totalorder %s2526_s7, %s2269_s30  ;;  %p2275_p6 = scmp.lt.u32.totalorder %s2526_s7, %s2866_s1 }
  0x4e   : > { %p2276_p8 = scmp.lt.u32.totalorder %s2274_s28, %s2269_s30  ;;  %p2278_p13 = scmp.lt.u32.totalorder %s2269_s30, %s2526_s7 }
  0x4f   : > { %p2272_p1 = pnand %p2270_p5, %p2241_p0 }
  0x50   : > { %p2277_p10 = por %p2276_p8, %p2275_p6 }
  0x51   : > { %p2273_p4 = pneg %p2272_p1 }
  0x52   : > { %p2279_p3 = por %p2278_p13, %p2277_p10 }
  0x54   : > { %p2280_p7 = pnand %p2279_p3, %p2273_p4 }
  0x56   : > { %2283 = shalt.err (!%p2280_p7)
}
  0x57   : > { %s2284_s29 = scalar_lea.vmem %s182_s11, 128  ;;  %s2379_s22 = smov [#allocation5]  }
  0x58   : > { %p2285_p9 = scmp.ne.s32.totalorder %s182_s11, %s2284_s29  ;;  %s2289_s26 = sshll.u32 %s2379_s22, 4  ;;  %s2290_s26 = int_to_ptr.vmem [resolvable:$false] %s2289_s26 }
  0x59   : > { %s2291_s8 = scalar_lea.vmem %s2290_s26, 256  ;;  %p2292_p1 = scmp.lt.s32.totalorder %s182_s11, %s2290_s26 }
  0x5a   : > { %p2287_p2 = pnand %p2285_p9, %p2241_p0  ;;  %p2293_p12 = scmp.lt.s32.totalorder %s2291_s8, %s2284_s29 }
  0x5c   : > { %p2288_p5 = pneg %p2287_p2  ;;  %p2294_p6 = por %p2293_p12, %p2292_p1 }
  0x5e   : > { %p2295_p8 = pnand %p2294_p6, %p2288_p5 }
  0x60   : > { %2298 = shalt.err (!%p2295_p8)
}
  0x61   : > { %2104 = dma.hbm_to_vmem [thread:$0]  (!%p2517_p11), %s2526_s7, 128, %s182_s11, %s171_s23  }
  0x62   : > { %p2880_p4 = scmp.ne.s32.totalorder %s2875_s20, 0 }
  0x63   : > { %s2577_s9 = sand.u32 (!%p2880_p4), 1, %s2365_s13   ;;  %p2881_p0 = scmp.ne.s32.totalorder (!%p2880_p4), %s2873_s18, 0 }
  0x64   : > { %190 = sbr.rel (%p2880_p4) target bundleno = 6282 (0x188a), region = 32  ;;  %s1823_s10 = sshll.u32 (!%p2880_p4), %s2577_s9, 3 }
  0x65   : > { %s193_s30 = scalar_lea.sflag (!%p2880_p4), [#allocation3], %s2577_s9  ;;  %s196_s25 = scalar_lea.vmem (!%p2880_p4), [#allocation2], %s1823_s10 }
  0x6b   : > { %2344 = dma.done.wait (%p2881_p0), %s193_s30, 128  }
  0x6c   : > { %2346 = vsyncadd (%p2881_p0), %s193_s30, 4294967168  ;;  %s201_s4 = sand.u32 1, %s2433_s16   ;;  %s2586_s20 = scalar_lea.vmem [#allocation5], %s1823_s10 }
  0x6d   : > { %s202_s7 = scalar_lea.sflag [#allocation6], %s201_s4 }
  0x6e   : > { %2348 = dma.done.wait (%p2881_p0), %s202_s7, 128  }
  0x6f   : > { %2350 = vsyncadd (%p2881_p0), %s202_s7, 4294967168  ;;  %p2882_p12 = scmp.eq.s32.totalorder %s2433_s16, 0 }
  0x71   : > { %2352 = dma.done.wait (%p2882_p12), [#allocation6], 1152   ;;  %p2883_p11 = pmov %p2882_p12 }
  0x72   : > { %v2380_v0 = vmov 0.0|0.0   ;;  %vm2381_vm0 = vmmov 0   ;;  %v2382_v1 = vmov 0.0   ;;  %v239_v2 = vld [vmem:[#allocation7] sm:$0xff]  ;;  %v240_v3 = vld [vmem:[#allocation7 + $0x8] sm:$0xff]  ;;  %v241_v4 = vld [vmem:[#allocation7 + $0x10] sm:$0xff]  ;;  %v248_v9 = vlaneseq }
  0x73   : > { %2354 = vsyncadd (%p2883_p11), [#allocation6], 4294966144  ;;  %2036 = vmatprep.subr.bf16.mxu0 %v2380_v0  ;;  %1916 = vmatprep.mubr.msk.f32.mxu0 %vm2381_vm0, %v2382_v1  ;;  %v2602_v5 = vpack.c.bf16 %v240_v3, %v239_v2  ;;  %v242_v6 = vld [vmem:[#allocation7 + $0x18] sm:$0xff]  ;;  %v2609_v8 = vld [vmem:[%s196_s25] sm:$0xff]  ;;  %vm252_vm1 = vcmask 261120   ;;  %s2383_s18 = smov 112  }
  0x74   : > { %1919 = vmatprep.subr.mxu1 %v2382_v1  ;;  %1921 = vmatprep.mubr.msk.f32.mxu1 %vm2381_vm0, %v2382_v1  ;;  %v2605_v7 = vpack.c.bf16 %v242_v6, %v241_v4  ;;  %v2616_v10 = vshrl.u32 %v248_v9, 7  ;;  %v2619_v12 = vld [vmem:[#allocation7 + $0x40] sm:$0xf]  ;;  %s2384_s11 = smov 96   ;;  %vm331_vm2 = vcmask 130048   ;;  %v2639_v21 = vld [vmem:[%s2586_s20] sm:$0xff] }
  0x75   : > { %2038 = vmatpush3.bf16.msra.mxu0 %v2602_v5  ;;  %vm486_vm3 = vcmask 64512   ;;  %s2385_s23 = smov 64   ;;  %v243_v49 = vld [vmem:[#allocation7 + $0x20] sm:$0xff]  ;;  %v244_v50 = vld [vmem:[#allocation7 + $0x28] sm:$0xff]  ;;  %v245_v51 = vld [vmem:[#allocation7 + $0x30] sm:$0xff]  ;;  %s2386_s27 = smov 16  }
  0x76   : > { %2039 = vmatprep.subr.bf16.mxu0 %v2380_v0  ;;  %v250_v11 = vsub.s32 0, %v2616_v10  ;;  %v2657_v52 = vpack.c.bf16 %v244_v50, %v243_v49  ;;  %v246_v53 = vld [vmem:[#allocation7 + $0x38] sm:$0xff]  ;;  %v668_v61 = vsub.s32 1, %v2616_v10  ;;  %s2387_s28 = smov 32   ;;  %s1826_s5 = sshll.u32 %s2577_s9, 4 }
  0x77   : > { %v2660_v54 = vpack.c.bf16 %v246_v53, %v245_v51  ;;  %s2740_s6 = scalar_lea.vmem [#allocation8], %s1826_s5  ;;  %s1849_s22 = sshll.u32 %s2433_s16, 7 }
  0x78   : > { %v2622_v13 = vrot.slane %v2619_v12, %v250_v11  ;;  %v2672_v62 = vrot.slane %v2619_v12, %v668_v61  ;;  %s1709_s29 = sshll.u32 %s2740_s6, 4  ;;  %s2819_s10 = scalar_lea.hbm %s2868_s3, %s1849_s22  ;;  %s2814_s29 = int_to_ptr.vmem [resolvable:$true] %s1709_s29 }
  0x79   : > { %2041 = vmatpush3.bf16.msra.mxu0 %v2605_v7  ;;  %s1697_s30 = scalar_lea.sflag [#allocation4], %s2577_s9  ;;  %s2299_s25 = scalar_lea.vmem %s2814_s29, 256 }
  0x7a   : > { %2042 = vmatprep.subr.bf16.mxu0 %v2380_v0  ;;  %p2300_p10 = scmp.ne.s32.totalorder %s2814_s29, %s2299_s25  ;;  %p2884_p13 = scmp.ne.s32.totalorder %s2878_s21, 0 }
  0x7b   : > { %s2388_s16 = smov [#allocation8]  }
  0x7c   : > { %1917 = vmatmul.mubr.msk.f32.vlgmr.msra.gmra.mrb[0].mxu0 %vm252_vm1, %v2609_v8  ;;  %p2301_p3 = pnand %p2300_p10, %p2884_p13  ;;  %s2303_s4 = sshll.u32 %s2388_s16, 4  ;;  %s2304_s4 = int_to_ptr.vmem [resolvable:$false] %s2303_s4 }
  0x7d   : > { %1947 = vmatprep.mubr.msk.f32.mxu0 %vm2381_vm0, %v2382_v1  ;;  %2044 = vmatpush3.bf16.msra.mxu0 %v2657_v52  ;;  %s2305_s7 = scalar_lea.vmem %s2304_s4, 512  ;;  %p2306_p9 = scmp.lt.s32.totalorder %s2814_s29, %s2304_s4 }
  0x7e   : > { %2045 = vmatprep.subr.bf16.mxu0 %v2380_v0  ;;  %p2302_p7 = pneg %p2301_p3  ;;  %p2307_p2 = scmp.lt.s32.totalorder %s2305_s7, %s2299_s25 }
  0x80   : > { %p2308_p5 = por %p2307_p2, %p2306_p9 }
  0x81   : > { %2047 = vmatpush3.bf16.msra.mxu0 %v2660_v54 }
  0x82   : > { %2054 = vmatprep.subr.bf16.mxu0 %v2380_v0  ;;  %p2309_p1 = pnand %p2308_p5, %p2302_p7 }
 0x14f   : > { %v322_v14 = vpop.f32.mrb[0].mxu0 }
 0x150   : > { %v323_v15 = vadd.f32 %v322_v14, %v2622_v13  ;;  %v1918_v16 = vpop.f32.mrb[1].mxu0 }
 0x152   : > { %327 = vrot.lane.b32.xlu0 %v323_v15, %s2383_s18 }
 0x156   : > { %329 = vrot.lane.b32.xlu0 %v323_v15, %s2384_s11 }
 0x1c4   : > { %v328_v17 = vpop.permute.xlu0 %327 }
 0x1c5   : > { %406 = vrot.lane.b32.xlu1 %v328_v17, %s2384_s11 }
 0x1c8   : > { %v330_v18 = vpop.permute.xlu0 %329 }
 0x1c9   : > { %1920 = vmatpush3.xpose.msk.msra.mxu1 %vm331_vm2, %v330_v18 }
 0x1ca   : > { %1924 = vmatprep.subr.mxu1 %v2382_v1 }
 0x1cc   : > { %1922 = vmatmul.mubr.msk.f32.vlgmr.msra.gmra.mrb[0].mxu1 %vm331_vm2, %v323_v15 }
 0x1cd   : > { %1926 = vmatprep.mubr.msk.f32.mxu1 %vm2381_vm0, %v2382_v1 }
 0x237   : > { %v407_v19 = vpop.permute.xlu1 %406 }
 0x238   : > { %1925 = vmatpush3.xpose.msk.msra.mxu1 %vm331_vm2, %v407_v19 }
 0x239   : > { %1929 = vmatprep.subr.mxu1 %v2382_v1 }
 0x23b   : > { %1927 = vmatmul.mubr.msk.f32.vlgmr.msra.gmra.mrb[2].mxu1 %vm331_vm2, %v328_v17 }
 0x23c   : > { %1931 = vmatprep.mubr.msk.f32.mxu1 %vm2381_vm0, %v2382_v1 }
 0x29f   : > { %v402_v20 = vpop.f32.mrb[0].mxu1 }
 0x2a0   : > { %v482_v22 = vmul.f32 0.25, %v402_v20  ;;  %v1923_v23 = vpop.f32.mrb[1].mxu1 }
 0x2a2   : > { %v484_v24 = vadd.f32 %v482_v22, %v2639_v21 }
 0x2a4   : > { %v487_v25 = vsel %vm486_vm3, %v484_v24, -inf }
 0x2a5   : > { %488 = vmax.xlane.f32.xlu1 %v487_v25 }
 0x30e   : > { %v478_v26 = vpop.f32.mrb[2].mxu1 }
 0x30f   : > { %v483_v27 = vmul.f32 0.25, %v478_v26  ;;  %v1928_v28 = vpop.f32.mrb[3].mxu1 }
 0x310   : > { %v2159_v28 = vpack.i.bf16 %v244_v50, %v243_v49 }
 0x311   : > { %v485_v29 = vadd.f32 %v483_v27, %v2639_v21 }
 0x313   : > { %v490_v30 = vsel %vm486_vm3, %v485_v29, -inf }
 0x314   : > { %491 = vmax.xlane.f32.xlu0 %v490_v30 }
 0x332   : > { %v489_v31 = vpop.xlane.xlu1 %488 }
 0x333   : > { %v493_v32 = vsub.f32 %v484_v24, %v489_v31 }
 0x335   : > { %v495_v33 = vmul.f32 1.442695, %v493_v32 }
 0x337   : > { %2179 = vpow2.f32 %v495_v33 }
 0x341   : > { %v2180_v34 = vpop.eup %2179 }
 0x342   : > { %v499_v35 = vsel %vm486_vm3, %v2180_v34, 0.0 }
 0x343   : > { %500 = vadd.xlane.f32.xlu0 %v499_v35 }
 0x359   : > { %509 = vrot.lane.b32.xlu0 %v323_v15, %s2385_s23 }
 0x3a1   : > { %v492_v36 = vpop.xlane.xlu0 %491 }
 0x3a2   : > { %v494_v37 = vsub.f32 %v485_v29, %v492_v36  ;;  %v777_v29 = vsub.s32 2, %v2616_v10 }
 0x3a4   : > { %v497_v38 = vmul.f32 1.442695, %v494_v37  ;;  %v2686_v30 = vrot.slane %v2619_v12, %v777_v29 }
 0x3a6   : > { %2181 = vpow2.f32 %v497_v38 }
 0x3b0   : > { %v2182_v39 = vpop.eup %2181 }
 0x3b1   : > { %v502_v40 = vsel %vm486_vm3, %v2182_v39, 0.0 }
 0x3b2   : > { %503 = vadd.xlane.f32.xlu1 %v502_v40 }
 0x3c3   : > { %585 = vrot.lane.b32.xlu1 %v328_v17, %s2385_s23  ;;  %v2164_v17 = vpack.i.bf16 %v246_v53, %v245_v51 }
 0x3d0   : > { %v501_v41 = vpop.xlane.xlu0 %500 }
 0x3d1   : > { %2183 = vrcp.f32 %v501_v41 }
 0x3d4   : > { %v510_v42 = vpop.permute.xlu0 %509 }
 0x3d5   : > { %1930 = vmatpush3.msra.mxu1 %v510_v42 }
 0x3d6   : > { %1934 = vmatprep.subr.mxu1 %v2382_v1 }
 0x3db   : > { %v2184_v43 = vpop.eup %2183 }
 0x3dc   : > { %v506_v44 = vmul.f32 %v2184_v43, %v2180_v34 }
 0x3de   : > { %1932 = vmatmul.mubr.msk.f32.vlgmr.msra.gmra.mrb[4].mxu1 %vm486_vm3, %v506_v44 }
 0x3df   : > { %1936 = vmatprep.mubr.msk.f32.mxu1 %vm2381_vm0, %v2382_v1 }
 0x43f   : > { %v504_v45 = vpop.xlane.xlu1 %503 }
 0x440   : > { %2185 = vrcp.f32 %v504_v45 }
 0x443   : > { %v586_v46 = vpop.permute.xlu1 %585 }
 0x444   : > { %1935 = vmatpush3.msra.mxu1 %v586_v46 }
 0x445   : > { %2048 = vmatprep.subr.bf16.mxu1 %v2380_v0 }
 0x44a   : > { %v2186_v47 = vpop.eup %2185 }
 0x44b   : > { %v508_v48 = vmul.f32 %v2186_v47, %v2182_v39 }
 0x44d   : > { %1937 = vmatmul.mubr.msk.f32.vlgmr.msra.gmra.mrb[6].mxu1 %vm486_vm3, %v508_v48 }
 0x44e   : > { %1958 = vmatprep.mubr.msk.f32.mxu1 %vm2381_vm0, %v2382_v1 }
 0x4b1   : > { %v581_v55 = vpop.f32.mrb[4].mxu1 }
 0x4b2   : > { %v1933_v56 = vpop.f32.mrb[5].mxu1 }
 0x520   : > { %v657_v57 = vpop.f32.mrb[6].mxu1 }
 0x521   : > { %662 = vrot.lane.b32.xlu1 %v657_v57, %s2386_s27  ;;  %v1938_v58 = vpop.f32.mrb[7].mxu1 }
 0x593   : > { %v663_v59 = vpop.permute.xlu1 %662 }
 0x594   : > { %v665_v60 = vsel %vm331_vm2, %v581_v55, %v663_v59 }
 0x595   : > { %1948 = vmatmul.mubr.msk.f32.vlgmr.msra.gmra.mrb[2].mxu0 %vm252_vm1, %v665_v60 }
 0x596   : > { %1969 = vmatprep.mubr.msk.f32.mxu0 %vm2381_vm0, %v2382_v1 }
 0x668   : > { %v739_v63 = vpop.f32.mrb[2].mxu0 }
 0x669   : > { %v740_v2 = vadd.f32 %v739_v63, %v2672_v62  ;;  %v1949_v3 = vpop.f32.mrb[3].mxu0 }
 0x66b   : > { %v743_v4 = vadd.f32 %v740_v2, %v2609_v8 }
 0x66d   : > { %v744_v6 = vsel %vm252_vm1, %v743_v4, 0.0 }
 0x66e   : > { %745 = vadd.xlane.f32.xlu0 %v744_v6 }
 0x6fb   : > { %v746_v9 = vpop.xlane.xlu0 %745 }
 0x6fc   : > { %v748_v11 = vmul.f32 0.03125, %v746_v9 }
 0x6fe   : > { %v749_v14 = vsub.f32 %v743_v4, %v748_v11  ;;  %v990_v11 = vsub.s32 3, %v2616_v10 }
 0x700   : > { %v750_v15 = vmul.f32 %v749_v14, %v749_v14 }
 0x702   : > { %v751_v16 = vsel %vm252_vm1, %v750_v15, 0.0 }
 0x703   : > { %752 = vadd.xlane.f32.xlu1 %v751_v16 }
 0x714   : > { %771 = vrot.lane.b32.xlu1 %v2672_v62, %s2384_s11 }
 0x718   : > { %2165 = vrot.lane.b32.xlu1 %v2164_v17, %s2384_s11 }
 0x71c   : > { %2170 = vrot.lane.b32.xlu1 %v2159_v28, %s2385_s23 }
 0x720   : > { %884 = vrot.lane.b32.xlu1 %v2686_v30, %s2384_s11 }
 0x790   : > { %v753_v18 = vpop.xlane.xlu1 %752 }
 0x791   : > { %v754_v19 = vmul.f32 0.03125, %v753_v18 }
 0x793   : > { %v755_v20 = vadd.f32 1e-12, %v754_v19 }
 0x794   : > { %v2688_v31 = vpop.permute.xlu1 %771 }
 0x795   : > { %2187 = vrsqrt.f32 %v755_v20  ;;  %vm758_vm4 = vcmp.eq.f32.partialorder %v755_v20, inf  ;;  %v761_v23 = vand.u32 2147483648, %v755_v20  ;;  %vm760_vm5 = vcmp.eq.f32.partialorder %v755_v20, 0.0 }
 0x798   : > { %v2166_v34 = vpop.permute.xlu1 %2165 }
 0x799   : > { %v2168_v37 = vunpack.i.h.bf16 %v2166_v34  ;;  %v2167_v40 = vunpack.i.l.bf16 %v2166_v34 }
 0x79b   : > { %v2697_v42 = vpack.c.bf16 %v2168_v37, %v2167_v40 }
 0x79c   : > { %v2171_v43 = vpop.permute.xlu1 %2170 }
 0x79d   : > { %v2173_v44 = vunpack.i.h.bf16 %v2171_v43  ;;  %v2172_v45 = vunpack.i.l.bf16 %v2171_v43 }
 0x79f   : > { %v2188_v8 = vpop.eup %2187  ;;  %v2704_v46 = vpack.c.bf16 %v2173_v44, %v2172_v45 }
 0x7a0   : > { %v757_v22 = vmul.f32 %v2188_v8, %v755_v20  ;;  %v2723_v57 = vpop.permute.xlu1 %884 }
 0x7a1   : > { %2056 = vmatpush3.bf16.msra.mxu0 %v2704_v46 }
 0x7a2   : > { %v759_v24 = vsel %vm758_vm4, %v755_v20, %v757_v22  ;;  %2057 = vmatprep.subr.bf16.mxu0 %v2380_v0 }
 0x7a3   : > { %v762_v25 = vsel %vm760_vm5, %v761_v23, %v759_v24 }
 0x7a4   : > { %2189 = vrcp.f32 %v762_v25 }
 0x7ae   : > { %v2190_v26 = vpop.eup %2189 }
 0x7af   : > { %v764_v27 = vmul.f32 %v2190_v26, %v749_v14  ;;  %v991_v14 = vrot.slane %v2619_v12, %v990_v11 }
 0x7b1   : > { %766 = vrot.lane.b32.xlu0 %v764_v27, %s2387_s28 }
 0x7b5   : > { %2160 = vrot.lane.b32.xlu0 %v2159_v28, %s2384_s11 }
 0x823   : > { %v767_v32 = vpop.permute.xlu0 %766 }
 0x824   : > { %v769_v33 = vmul.f32 %v767_v32, %v2672_v62 }
 0x826   : > { %v774_v35 = vadd.f32 %v2688_v31, %v769_v33 }
 0x827   : > { %v2161_v36 = vpop.permute.xlu0 %2160 }
 0x828   : > { %780 = vrot.lane.b32.xlu0 %v774_v35, %s2384_s11  ;;  %v2163_v38 = vunpack.i.h.bf16 %v2161_v36  ;;  %v2162_v39 = vunpack.i.l.bf16 %v2161_v36 }
 0x82a   : > { %v2695_v41 = vpack.c.bf16 %v2163_v38, %v2162_v39 }
 0x82c   : > { %2050 = vmatpush3.bf16.msra.mxu1 %v2695_v41  ;;  %2175 = vrot.lane.b32.xlu0 %v2164_v17, %s2385_s23 }
 0x82d   : > { %2051 = vmatprep.subr.bf16.mxu1 %v2380_v0 }
 0x830   : > { %2053 = vmatpush3.bf16.msra.mxu1 %v2697_v42 }
 0x831   : > { %2060 = vmatprep.subr.bf16.mxu1 %v2380_v0 }
 0x89a   : > { %v781_v47 = vpop.permute.xlu0 %780 }
 0x89b   : > { %1959 = vmatmul.mubr.msk.f32.vlgmr.msra.gmra.mrb[8].mxu1 %vm252_vm1, %v781_v47 }
 0x89c   : > { %2062 = vmatpush3.bf16.msra.mxu1 %v2602_v5  ;;  %1980 = vmatprep.mubr.msk.f32.mxu1 %vm2381_vm0, %v2382_v1 }
 0x89d   : > { %2063 = vmatprep.subr.bf16.mxu1 %v2380_v0 }
 0x89e   : > { %v2176_v48 = vpop.permute.xlu0 %2175 }
 0x89f   : > { %v2178_v49 = vunpack.i.h.bf16 %v2176_v48  ;;  %v2177_v50 = vunpack.i.l.bf16 %v2176_v48 }
 0x8a0   : > { %2065 = vmatpush3.bf16.msra.mxu1 %v2605_v7 }
 0x8a1   : > { %v2714_v51 = vpack.c.bf16 %v2178_v49, %v2177_v50  ;;  %1988 = vmatprep.subr.mxu1 %v2382_v1 }
 0x8a3   : > { %2059 = vmatpush3.bf16.msra.mxu0 %v2714_v51 }
 0x8a4   : > { %1983 = vmatprep.subr.mxu0 %v2382_v1 }
 0x96e   : > { %v866_v53 = vpop.f32.mrb[8].mxu1 }
 0x96f   : > { %v867_v5 = vadd.f32 %v866_v53, %v2686_v30  ;;  %v1960_v55 = vpop.f32.mrb[9].mxu1 }
 0x971   : > { %v870_v56 = vmax.f32 %v867_v5, 0.0 }
 0x973   : > { %1970 = vmatmul.mubr.msk.f32.vlgmr.msra.gmra.mrb[4].mxu0 %vm252_vm1, %v870_v56 }
 0x974   : > { %1985 = vmatprep.mubr.msk.f32.mxu0 %vm2381_vm0, %v2382_v1 }
 0xa46   : > { %v956_v7 = vpop.f32.mrb[4].mxu0 }
 0xa47   : > { %v957_v58 = vadd.f32 %v956_v7, %v2723_v57  ;;  %v1971_v59 = vpop.f32.mrb[5].mxu0 }
 0xa49   : > { %v960_v60 = vmax.f32 %v957_v58, 0.0 }
 0xa4b   : > { %v962_v61 = vadd.f32 %v960_v60, %v781_v47 }
 0xa4d   : > { %v963_v63 = vsel %vm252_vm1, %v962_v61, 0.0 }
 0xa4e   : > { %964 = vadd.xlane.f32.xlu0 %v963_v63 }
 0xadb   : > { %v965_v2 = vpop.xlane.xlu0 %964 }
 0xadc   : > { %v966_v3 = vmul.f32 0.03125, %v965_v2 }
 0xade   : > { %v967_v4 = vsub.f32 %v962_v61, %v966_v3 }
 0xae0   : > { %v968_v6 = vmul.f32 %v967_v4, %v967_v4 }
 0xae2   : > { %v969_v9 = vsel %vm252_vm1, %v968_v6, 0.0 }
 0xae3   : > { %970 = vadd.xlane.f32.xlu1 %v969_v9 }
 0xaf4   : > { %993 = vrot.lane.b32.xlu1 %v991_v14, %s2385_s23 }
 0xb70   : > { %v971_v15 = vpop.xlane.xlu1 %970 }
 0xb71   : > { %v972_v16 = vmul.f32 0.03125, %v971_v15 }
 0xb73   : > { %v973_v17 = vadd.f32 1e-12, %v972_v16 }
 0xb74   : > { %v2732_v12 = vpop.permute.xlu1 %993 }
 0xb75   : > { %2191 = vrsqrt.f32 %v973_v17  ;;  %vm976_vm6 = vcmp.eq.f32.partialorder %v973_v17, inf  ;;  %v979_v20 = vand.u32 2147483648, %v973_v17  ;;  %vm978_vm7 = vcmp.eq.f32.partialorder %v973_v17, 0.0 }
 0xb7f   : > { %v2192_v18 = vpop.eup %2191 }
 0xb80   : > { %v975_v19 = vmul.f32 %v2192_v18, %v973_v17 }
 0xb82   : > { %v977_v8 = vsel %vm976_vm6, %v973_v17, %v975_v19 }
 0xb83   : > { %v980_v22 = vsel %vm978_vm7, %v979_v20, %v977_v8 }
 0xb84   : > { %2193 = vrcp.f32 %v980_v22 }
 0xb8e   : > { %v2194_v23 = vpop.eup %2193 }
 0xb8f   : > { %v982_v24 = vmul.f32 %v2194_v23, %v967_v4 }
 0xb91   : > { %984 = vrot.lane.b32.xlu0 %v982_v24, %s2385_s23 }
 0xc03   : > { %v985_v10 = vpop.permute.xlu0 %984 }
 0xc04   : > { %v987_v25 = vmul.f32 %v985_v10, %v2686_v30 }
 0xc06   : > { %v996_v26 = vadd.f32 %v2732_v12, %v987_v25 }
 0xc08   : > { %998 = vrot.lane.b32.xlu0 %v996_v26, %s2385_s23 }
 0xc7a   : > { %v2738_v27 = vpop.permute.xlu0 %998 }
 0xc7b   : > { %1001 = vst.msk [vmem:[%s2740_s6] sm:$0xff] %vm252_vm1, %v2738_v27  ;;  %1981 = vmatmul.mubr.msk.f32.vlgmr.msra.gmra.mrb[10].mxu1 %vm252_vm1, %v2738_v27 }
 0xc7c   : > { %1990 = vmatprep.mubr.msk.f32.mxu1 %vm2381_vm0, %v2382_v1 }
 0xd4e   : > { %v1070_v28 = vpop.f32.mrb[10].mxu1 }
 0xd4f   : > { %v1071_v29 = vadd.f32 %v1070_v28, %v2622_v13  ;;  %v1982_v32 = vpop.f32.mrb[11].mxu1 }
 0xd51   : > { %1075 = vrot.lane.b32.xlu1 %v1071_v29, %s2383_s18 }
 0xd55   : > { %1077 = vrot.lane.b32.xlu1 %v1071_v29, %s2384_s11 }
 0xdc3   : > { %v1076_v33 = vpop.permute.xlu1 %1075 }
 0xdc4   : > { %1153 = vrot.lane.b32.xlu0 %v1076_v33, %s2384_s11 }
 0xdc7   : > { %v1078_v34 = vpop.permute.xlu1 %1077 }
 0xdc8   : > { %1984 = vmatpush3.xpose.msk.msra.mxu0 %vm331_vm2, %v1078_v34 }
 0xdc9   : > { %1993 = vmatprep.subr.mxu0 %v2382_v1 }
 0xdcb   : > { %1986 = vmatmul.mubr.msk.f32.vlgmr.msra.gmra.mrb[6].mxu0 %vm331_vm2, %v1071_v29 }
 0xdcc   : > { %1995 = vmatprep.mubr.msk.f32.mxu0 %vm2381_vm0, %v2382_v1 }
 0xe36   : > { %v1154_v35 = vpop.permute.xlu0 %1153 }
 0xe37   : > { %1989 = vmatpush3.xpose.msk.msra.mxu1 %vm331_vm2, %v1154_v35 }
 0xe38   : > { %1998 = vmatprep.subr.mxu1 %v2382_v1 }
 0xe3a   : > { %1991 = vmatmul.mubr.msk.f32.vlgmr.msra.gmra.mrb[12].mxu1 %vm331_vm2, %v1076_v33 }
 0xe3b   : > { %2000 = vmatprep.mubr.msk.f32.mxu1 %vm2381_vm0, %v2382_v1 }
 0xe9e   : > { %v1149_v13 = vpop.f32.mrb[6].mxu0 }
 0xe9f   : > { %v1229_v36 = vmul.f32 0.25, %v1149_v13  ;;  %v1987_v37 = vpop.f32.mrb[7].mxu0 }
 0xea1   : > { %v1231_v38 = vadd.f32 %v1229_v36, %v2639_v21 }
 0xea3   : > { %v1233_v39 = vsel %vm486_vm3, %v1231_v38, -inf }
 0xea4   : > { %1234 = vmax.xlane.f32.xlu1 %v1233_v39 }
 0xf0d   : > { %v1225_v40 = vpop.f32.mrb[12].mxu1 }
 0xf0e   : > { %v1230_v43 = vmul.f32 0.25, %v1225_v40  ;;  %v1992_v44 = vpop.f32.mrb[13].mxu1 }
 0xf10   : > { %v1232_v45 = vadd.f32 %v1230_v43, %v2639_v21 }
 0xf12   : > { %v1236_v47 = vsel %vm486_vm3, %v1232_v45, -inf }
 0xf13   : > { %1237 = vmax.xlane.f32.xlu0 %v1236_v47 }
 0xf31   : > { %v1235_v48 = vpop.xlane.xlu1 %1234 }
 0xf32   : > { %v1239_v49 = vsub.f32 %v1231_v38, %v1235_v48 }
 0xf34   : > { %v1241_v50 = vmul.f32 1.442695, %v1239_v49 }
 0xf36   : > { %2195 = vpow2.f32 %v1241_v50 }
 0xf40   : > { %v2196_v53 = vpop.eup %2195 }
 0xf41   : > { %v1245_v5 = vsel %vm486_vm3, %v2196_v53, 0.0 }
 0xf42   : > { %1246 = vadd.xlane.f32.xlu1 %v1245_v5 }
 0xf53   : > { %1255 = vrot.lane.b32.xlu1 %v1071_v29, %s2385_s23 }
 0xfa0   : > { %v1238_v55 = vpop.xlane.xlu0 %1237 }
 0xfa1   : > { %v1240_v56 = vsub.f32 %v1232_v45, %v1238_v55 }
 0xfa3   : > { %v1243_v7 = vmul.f32 1.442695, %v1240_v56 }
 0xfa5   : > { %2197 = vpow2.f32 %v1243_v7 }
 0xfaf   : > { %v2198_v58 = vpop.eup %2197 }
 0xfb0   : > { %v1248_v21 = vsel %vm486_vm3, %v2198_v58, 0.0 }
 0xfb1   : > { %1249 = vadd.xlane.f32.xlu0 %v1248_v21 }
 0xfc7   : > { %1331 = vrot.lane.b32.xlu0 %v1076_v33, %s2385_s23 }
 0xfcf   : > { %v1247_v59 = vpop.xlane.xlu1 %1246 }
 0xfd0   : > { %2199 = vrcp.f32 %v1247_v59 }
 0xfd3   : > { %v1256_v60 = vpop.permute.xlu1 %1255 }
 0xfd4   : > { %1994 = vmatpush3.msra.mxu0 %v1256_v60 }
 0xfd5   : > { %2066 = vmatprep.subr.bf16.mxu0 %v2380_v0 }
 0xfda   : > { %v2200_v61 = vpop.eup %2199 }
 0xfdb   : > { %v1252_v63 = vmul.f32 %v2200_v61, %v2196_v53 }
 0xfdd   : > { %1996 = vmatmul.mubr.msk.f32.vlgmr.msra.gmra.mrb[8].mxu0 %vm486_vm3, %v1252_v63 }
 0xfde   : > { %2068 = vmatpush3.bf16.msra.mxu0 %v2657_v52  ;;  %2011 = vmatprep.mubr.msk.f32.mxu0 %vm2381_vm0, %v2382_v1 }
 0xfdf   : > { %2069 = vmatprep.subr.bf16.mxu0 %v2380_v0 }
 0xfe2   : > { %2071 = vmatpush3.bf16.msra.mxu0 %v2660_v54 }
 0xfe3   : > { %2078 = vmatprep.subr.bf16.mxu0 %v2380_v0 }
0x103e   : > { %v1250_v2 = vpop.xlane.xlu0 %1249 }
0x103f   : > { %2201 = vrcp.f32 %v1250_v2 }
0x1042   : > { %v1332_v3 = vpop.permute.xlu0 %1331 }
0x1043   : > { %1999 = vmatpush3.msra.mxu1 %v1332_v3 }
0x1044   : > { %2072 = vmatprep.subr.bf16.mxu1 %v2380_v0 }
0x1049   : > { %v2202_v4 = vpop.eup %2201 }
0x104a   : > { %v1254_v6 = vmul.f32 %v2202_v4, %v2198_v58 }
0x104c   : > { %2001 = vmatmul.mubr.msk.f32.vlgmr.msra.gmra.mrb[14].mxu1 %vm486_vm3, %v1254_v6 }
0x104d   : > { %2074 = vmatpush3.bf16.msra.mxu1 %v2695_v41  ;;  %2022 = vmatprep.mubr.msk.f32.mxu1 %vm2381_vm0, %v2382_v1 }
0x104e   : > { %2075 = vmatprep.subr.bf16.mxu1 %v2380_v0 }
0x1051   : > { %2077 = vmatpush3.bf16.msra.mxu1 %v2697_v42 }
0x10b0   : > { %v1327_v52 = vpop.f32.mrb[8].mxu0 }
0x10b1   : > { %v1997_v54 = vpop.f32.mrb[9].mxu0 }
0x111f   : > { %v1403_v9 = vpop.f32.mrb[14].mxu1 }
0x1120   : > { %1408 = vrot.lane.b32.xlu0 %v1403_v9, %s2386_s27  ;;  %v2002_v11 = vpop.f32.mrb[15].mxu1 }
0x1192   : > { %v1409_v14 = vpop.permute.xlu0 %1408 }
0x1193   : > { %v1411_v15 = vsel %vm331_vm2, %v1327_v52, %v1409_v14 }
0x1194   : > { %2012 = vmatmul.mubr.msk.f32.vlgmr.msra.gmra.mrb[10].mxu0 %vm252_vm1, %v1411_v15 }
0x1195   : > { %2080 = vmatpush3.bf16.msra.mxu0 %v2704_v46  ;;  %2033 = vmatprep.mubr.msk.f32.mxu0 %vm2381_vm0, %v2382_v1 }
0x1196   : > { %2081 = vmatprep.subr.bf16.mxu0 %v2380_v0 }
0x1199   : > { %2083 = vmatpush3.bf16.msra.mxu0 %v2714_v51 }
0x1267   : > { %v1481_v41 = vpop.f32.mrb[10].mxu0 }
0x1268   : > { %v1482_v42 = vadd.f32 %v1481_v41, %v2672_v62  ;;  %v2013_v16 = vpop.f32.mrb[11].mxu0 }
0x126a   : > { %v1485_v17 = vadd.f32 %v1482_v42, %v2738_v27 }
0x126c   : > { %v1486_v18 = vsel %vm252_vm1, %v1485_v17, 0.0 }
0x126d   : > { %1487 = vadd.xlane.f32.xlu1 %v1486_v18 }
0x12fa   : > { %v1488_v19 = vpop.xlane.xlu1 %1487 }
0x12fb   : > { %v1489_v20 = vmul.f32 0.03125, %v1488_v19 }
0x12fd   : > { %v1490_v8 = vsub.f32 %v1485_v17, %v1489_v20 }
0x12ff   : > { %v1491_v46 = vmul.f32 %v1490_v8, %v1490_v8 }
0x1301   : > { %v1492_v22 = vsel %vm252_vm1, %v1491_v46, 0.0 }
0x1302   : > { %1493 = vadd.xlane.f32.xlu0 %v1492_v22 }
0x138f   : > { %v1494_v1 = vpop.xlane.xlu0 %1493 }
0x1390   : > { %v1495_v0 = vmul.f32 0.03125, %v1494_v1 }
0x1392   : > { %v1496_v23 = vadd.f32 1e-12, %v1495_v0 }
0x1394   : > { %2203 = vrsqrt.f32 %v1496_v23  ;;  %vm1499_vm8 = vcmp.eq.f32.partialorder %v1496_v23, inf  ;;  %v1502_v10 = vand.u32 2147483648, %v1496_v23  ;;  %vm1501_vm9 = vcmp.eq.f32.partialorder %v1496_v23, 0.0 }
0x139e   : > { %v2204_v51 = vpop.eup %2203 }
0x139f   : > { %v1498_v24 = vmul.f32 %v2204_v51, %v1496_v23 }
0x13a1   : > { %v1500_v25 = vsel %vm1499_vm8, %v1496_v23, %v1498_v24 }
0x13a2   : > { %v1503_v26 = vsel %vm1501_vm9, %v1502_v10, %v1500_v25 }
0x13a3   : > { %2205 = vrcp.f32 %v1503_v26 }
0x13ad   : > { %v2206_v27 = vpop.eup %2205 }
0x13ae   : > { %v1505_v28 = vmul.f32 %v2206_v27, %v1490_v8 }
0x13b0   : > { %1507 = vrot.lane.b32.xlu0 %v1505_v28, %s2387_s28 }
0x1422   : > { %v1508_v29 = vpop.permute.xlu0 %1507 }
0x1423   : > { %v1510_v32 = vmul.f32 %v1508_v29, %v2672_v62 }
0x1425   : > { %v1511_v33 = vadd.f32 %v1510_v32, %v2688_v31 }
0x1427   : > { %1513 = vrot.lane.b32.xlu1 %v1511_v33, %s2384_s11 }
0x1499   : > { %v1514_v34 = vpop.permute.xlu1 %1513 }
0x149a   : > { %2023 = vmatmul.mubr.msk.f32.vlgmr.msra.gmra.mrb[16].mxu1 %vm252_vm1, %v1514_v34 }
0x156d   : > { %v1583_v35 = vpop.f32.mrb[16].mxu1 }
0x156e   : > { %v1584_v13 = vadd.f32 %v1583_v35, %v2686_v30  ;;  %v2024_v36 = vpop.f32.mrb[17].mxu1 }
0x1570   : > { %v1587_v37 = vmax.f32 %v1584_v13, 0.0 }
0x1572   : > { %2034 = vmatmul.mubr.msk.f32.vlgmr.msra.gmra.mrb[12].mxu0 %vm252_vm1, %v1587_v37 }
0x1645   : > { %v1657_v38 = vpop.f32.mrb[12].mxu0 }
0x1646   : > { %v1658_v39 = vadd.f32 %v1657_v38, %v2723_v57  ;;  %v2035_v40 = vpop.f32.mrb[13].mxu0 }
0x1648   : > { %v1661_v43 = vmax.f32 %v1658_v39, 0.0 }
0x164a   : > { %v1663_v62 = vadd.f32 %v1661_v43, %v1514_v34 }
0x164c   : > { %v1664_v31 = vsel %vm252_vm1, %v1663_v62, 0.0 }
0x164d   : > { %1665 = vadd.xlane.f32.xlu1 %v1664_v31 }
0x16da   : > { %v1666_v44 = vpop.xlane.xlu1 %1665 }
0x16db   : > { %v1667_v45 = vmul.f32 0.03125, %v1666_v44 }
0x16dd   : > { %v1668_v47 = vsub.f32 %v1663_v62, %v1667_v45 }
0x16df   : > { %v1669_v48 = vmul.f32 %v1668_v47, %v1668_v47 }
0x16e1   : > { %v1670_v49 = vsel %vm252_vm1, %v1669_v48, 0.0 }
0x16e2   : > { %1671 = vadd.xlane.f32.xlu0 %v1670_v49 }
0x176f   : > { %v1672_v50 = vpop.xlane.xlu0 %1671 }
0x1770   : > { %v1673_v53 = vmul.f32 0.03125, %v1672_v50 }
0x1772   : > { %v1674_v5 = vadd.f32 1e-12, %v1673_v53 }
0x1774   : > { %2207 = vrsqrt.f32 %v1674_v5  ;;  %vm1677_vm10 = vcmp.eq.f32.partialorder %v1674_v5, inf  ;;  %v1680_v56 = vand.u32 2147483648, %v1674_v5  ;;  %vm1679_vm11 = vcmp.eq.f32.partialorder %v1674_v5, 0.0 }
0x177e   : > { %v2208_v55 = vpop.eup %2207 }
0x177f   : > { %v1676_v57 = vmul.f32 %v2208_v55, %v1674_v5 }
0x1781   : > { %v1678_v7 = vsel %vm1677_vm10, %v1674_v5, %v1676_v57 }
0x1782   : > { %v1681_v58 = vsel %vm1679_vm11, %v1680_v56, %v1678_v7 }
0x1783   : > { %2209 = vrcp.f32 %v1681_v58 }
0x178d   : > { %v2210_v21 = vpop.eup %2209 }
0x178e   : > { %v1683_v59 = vmul.f32 %v2210_v21, %v1668_v47 }
0x1790   : > { %1685 = vrot.lane.b32.xlu0 %v1683_v59, %s2385_s23 }
0x1802   : > { %v1686_v60 = vpop.permute.xlu0 %1685 }
0x1803   : > { %v1688_v61 = vmul.f32 %v1686_v60, %v2686_v30 }
0x1805   : > { %v1689_v63 = vadd.f32 %v1688_v61, %v2732_v12 }
0x1807   : > { %1691 = vrot.lane.b32.xlu1 %v1689_v63, %s2385_s23 }
0x1879   : > { %v1692_v2 = vpop.permute.xlu1 %1691 }
0x187a   : > { %1847 = vst.msk [vmem:[%s2740_s6 + $0x8] sm:$0xff] %vm252_vm1, %v1692_v2 }
0x187b   : > { %2312 = shalt.err (!%p2309_p1)
}
0x187c   : > { %s2313_s20 = scalar_lea.hbm %s2819_s10, 256  ;;  %s2317_s23 = scalar_lea.hbm %s2868_s3, 512 }
0x187d   : > { %p2314_p6 = scmp.ne.s32.totalorder %s2819_s10, %s2313_s20  ;;  %p2318_p0 = scmp.lt.u32.totalorder %s2819_s10, %s2868_s3 }
0x187e   : > { %p2319_p12 = scmp.lt.u32.totalorder %s2317_s23, %s2313_s20  ;;  %p2321_p10 = scmp.lt.u32.totalorder %s2313_s20, %s2819_s10 }
0x187f   : > { %p2315_p8 = pnand %p2314_p6, %p2884_p13 }
0x1880   : > { %p2320_p11 = por %p2319_p12, %p2318_p0 }
0x1881   : > { %p2316_p4 = pneg %p2315_p8 }
0x1882   : > { %p2322_p3 = por %p2321_p10, %p2320_p11 }
0x1884   : > { %p2323_p7 = pnand %p2322_p3, %p2316_p4 }
0x1886   : > { %2326 = shalt.err (!%p2323_p7)
}
0x1887   : > { %s2389_s5 = smov 128   ;;  %s2390_s6 = smov 256  }
0x1888   : > { %s2391_s22 = smov 8  }
0x1889   : > { %2092 = dma.vmem_to_hbm [thread:$0]  (%p2884_p13), %s2814_s29, 256, %s2819_s10, %s1697_s30, %s2389_s5, %s2390_s6, %s2391_s22  }
0x188a PF: > { %s1724_s26 = sand.u32 1, %s2361_s12   ;;  %p2885_p9 = scmp.ne.s32.totalorder %s2874_s19, 0 }
0x188b   : > { %p2886_p2 = scmp.ge.s32.totalorder %s2373_s15, 2  ;;  %s1725_s8 = scalar_lea.sflag [#allocation4], %s1724_s26 }
0x188d   : > { %p2106_p5 = pnand %p2886_p2, %p2885_p9 }
0x188f   : > { %2356 = dma.done.wait (!%p2106_p5), %s1725_s8, 256  }
0x1890   : > { %2358 = vsyncadd (!%p2106_p5), %s1725_s8, 4294967040  ;;  %p19_p1 = scmp.ge.s32.totalorder %s2468_s24, 4   ;;  %s2887_s12 = smov %s2365_s13 }
0x1891   : > { %s2888_s13 = smov %s2369_s14  ;;  %s2889_s14 = smov %s2499_s17 }
0x1892   : > { %s2890_s15 = smov %s2468_s24  ;;  %21 = sbr.rel (!%p19_p1) target bundleno = 7 (0x7), region = 95 }
0x1899   :  { %1730 = vsyncpa [#allocation3], 1 }
0x189a   :  { %1732 = vsyncpa [#allocation3 + $0x1], 1 }
0x189b   :  { %1733 = vsyncpa [#allocation6], 1 }
0x189c   :  { %1735 = vsyncpa [#allocation6 + $0x1], 1 }
0x189d   :  { %1736 = vsyncpa [#allocation4], 1 }
0x189e   :  { %1738 = vsyncpa [#allocation4 + $0x1], 1 }

</bundles_post_ra>
